<compile_context>
chip_gen: v7x
topology: tpu7x:2x2x1
jax: 0.10.0
libtpu: 0.0.40
codegen_flags: <defaults>
</compile_context>

<pallas_src>
import functools
import math

import jax
import jax.numpy as jnp
from jax.experimental import pallas as pl
from jax.experimental.pallas import tpu as pltpu


def _double_conv_kernel(x_ref, w1_ref, g1_ref, b1_ref, w2_ref, g2_ref, b2_ref,
                        col_ref, out_ref, xpad_ref, hpad_ref, *,
                        H, W, residual, eps=1e-5):
    HW = H * W
    PAD = W + 1                     # covers the largest tap shift |(dy-1)*W + (dx-1)| = W+1
    Cin = x_ref.shape[1]
    Cmid = w1_ref.shape[2]
    Cout = w2_ref.shape[2]
    inv_sqrt2 = 1.0 / math.sqrt(2.0)

    col = col_ref[...]              # (1, HW) int32: x-coordinate of each flattened pixel
    not_left = col > 0              # output columns whose dx=0 tap source is in-bounds
    not_right = col < (W - 1)       # output columns whose dx=2 tap source is in-bounds

    def conv3x3(src_pad_ref, w_ref, cout):
        # src_pad_ref: (C, PAD + HW + PAD) f32, zero-halo flattened image.
        # 3x3 conv with padding=1 as 9 lane-shifted (C, HW) patches x (cout, C) MXU matmuls.
        # Vertical out-of-bounds taps land in the zero halo; horizontal row-wrap is masked.
        acc = jnp.zeros((cout, HW), jnp.float32)
        for dy in range(3):
            for dx in range(3):
                s = (dy - 1) * W + (dx - 1)
                patch = src_pad_ref[:, PAD + s:PAD + s + HW]      # (C, HW) f32
                if dx == 0:
                    patch = jnp.where(not_left, patch, 0.0)
                elif dx == 2:
                    patch = jnp.where(not_right, patch, 0.0)
                acc = acc + jnp.dot(w_ref[dy, dx],                # (cout, C) bf16
                                    patch.astype(jnp.bfloat16),   # (C, HW)  bf16
                                    preferred_element_type=jnp.float32)
        return acc

    def groupnorm1(v, g_ref, b_ref):
        # GroupNorm(num_groups=1): one-pass biased stats over all (C, H*W) of this sample.
        cnt = float(v.shape[0] * v.shape[1])
        s1 = jnp.sum(v)
        s2 = jnp.sum(v * v)
        mean = s1 / cnt
        var = s2 / cnt - mean * mean
        return (v - mean) * jax.lax.rsqrt(var + eps) * g_ref[...] + b_ref[...]

    def gelu(v):
        # exact erf form, matching nn.GELU() default
        return 0.5 * v * (1.0 + jax.lax.erf(v * inv_sqrt2))

    # Zero the halo strips (re-done every grid step: scratch is not guaranteed initialized on
    # every core when the batch axis is sharded "parallel"; the strips are only 2*(W+1) lanes).
    zx = jnp.zeros((Cin, PAD), jnp.float32)
    xpad_ref[:, :PAD] = zx
    xpad_ref[:, PAD + HW:] = zx
    zh = jnp.zeros((Cmid, PAD), jnp.float32)
    hpad_ref[:, :PAD] = zh
    hpad_ref[:, PAD + HW:] = zh

    # ---- conv1 -> GroupNorm(1) -> GELU ----
    x = x_ref[0].astype(jnp.float32)                 # (Cin, HW)
    xpad_ref[:, PAD:PAD + HW] = x
    h = conv3x3(xpad_ref, w1_ref, Cmid)
    h = gelu(groupnorm1(h, g1_ref, b1_ref))

    # ---- conv2 -> GroupNorm(1) ----
    hpad_ref[:, PAD:PAD + HW] = h
    y = conv3x3(hpad_ref, w2_ref, Cout)
    y = groupnorm1(y, g2_ref, b2_ref)

    if residual:
        # residual branch: GELU(x + double_conv(x)); requires in_ch == out_ch (checked in wrapper)
        y = gelu(x + y)

    out_ref[0] = y.astype(out_ref.dtype)


def double_conv(x_nchw, w1_oihw, g1, b1, w2_oihw, g2, b2, *, residual=False):
    """Pallas implementation of DoubleConv.forward. x_nchw: (N, Cin, H, W) float32."""
    N, Cin, H, W = x_nchw.shape
    Cmid = w1_oihw.shape[0]
    Cout = w2_oihw.shape[0]
    assert w1_oihw.shape == (Cmid, Cin, 3, 3), w1_oihw.shape
    assert w2_oihw.shape == (Cout, Cmid, 3, 3), w2_oihw.shape
    if residual and Cin != Cout:
        raise ValueError("residual DoubleConv requires in_ch == out_ch")
    HW = H * W
    PAD = W + 1

    # glue (all free / tiny): contiguous reshape of x, weight relayout + bf16 cast, per-channel
    # gamma/beta as (C, 1) columns, and an int32 column-index vector for the row-edge masks.
    x_flat = x_nchw.reshape(N, Cin, HW)                                   # bitcast, no HBM pass
    w1r = jnp.transpose(w1_oihw, (2, 3, 0, 1)).astype(jnp.bfloat16)       # (3, 3, Cmid, Cin)
    w2r = jnp.transpose(w2_oihw, (2, 3, 0, 1)).astype(jnp.bfloat16)       # (3, 3, Cout, Cmid)
    g1c, b1c = g1.reshape(Cmid, 1), b1.reshape(Cmid, 1)
    g2c, b2c = g2.reshape(Cout, 1), b2.reshape(Cout, 1)
    col = (jnp.arange(HW, dtype=jnp.int32) % W).reshape(1, HW)

    kernel = functools.partial(_double_conv_kernel, H=H, W=W, residual=residual)
    out_flat = pl.pallas_call(
        kernel,
        out_shape=jax.ShapeDtypeStruct((N, Cout, HW), x_nchw.dtype),
        grid_spec=pltpu.PrefetchScalarGridSpec(
            num_scalar_prefetch=0,
            grid=(N,),
            in_specs=[
                pl.BlockSpec((1, Cin, HW), lambda n: (n, 0, 0)),
                pl.BlockSpec((3, 3, Cmid, Cin), lambda n: (0, 0, 0, 0)),
                pl.BlockSpec((Cmid, 1), lambda n: (0, 0)),
                pl.BlockSpec((Cmid, 1), lambda n: (0, 0)),
                pl.BlockSpec((3, 3, Cout, Cmid), lambda n: (0, 0, 0, 0)),
                pl.BlockSpec((Cout, 1), lambda n: (0, 0)),
                pl.BlockSpec((Cout, 1), lambda n: (0, 0)),
                pl.BlockSpec((1, HW), lambda n: (0, 0)),
            ],
            out_specs=pl.BlockSpec((1, Cout, HW), lambda n: (n, 0, 0)),
            scratch_shapes=[
                pltpu.VMEM((Cin, HW + 2 * PAD), jnp.float32),   # zero-halo flattened input
                pltpu.VMEM((Cmid, HW + 2 * PAD), jnp.float32),  # zero-halo flattened intermediate
            ],
        ),
        compiler_params=pltpu.CompilerParams(dimension_semantics=("parallel",)),
    )(x_flat, w1r, g1c, b1c, w2r, g2c, b2c, col)
    return out_flat.reshape(N, Cout, H, W)                                # bitcast, no HBM pass


def _reference(x, w1, g1, b1, w2, g2, b2, residual=False, eps=1e-5):
    """Pure-JAX reference matching the PyTorch forward (NCHW / OIHW)."""
    def conv(x, w):
        return jax.lax.conv_general_dilated(
            x, w, window_strides=(1, 1), padding=((1, 1), (1, 1)),
            dimension_numbers=("NCHW", "OIHW", "NCHW"))

    def gn1(x, g, b):
        mean = jnp.mean(x, axis=(1, 2, 3), keepdims=True)
        var = jnp.mean((x - mean) ** 2, axis=(1, 2, 3), keepdims=True)
        xn = (x - mean) * jax.lax.rsqrt(var + eps)
        return xn * g[None, :, None, None] + b[None, :, None, None]

    h = gn1(conv(x, w1), g1, b1)
    h = jax.nn.gelu(h, approximate=False)
    y = gn1(conv(h, w2), g2, b2)
    if residual:
        y = jax.nn.gelu(x + y, approximate=False)
    return y


if __name__ == "__main__":
    key = jax.random.PRNGKey(0)
    keys = jax.random.split(key, 14)

    # --- DoubleConv(in_ch=4, out_ch=8) on a 16x16 image, residual=False ---
    N, Cin, H, W = 2, 4, 16, 16
    Cout = 8
    Cmid = Cout  # mid_ch defaults to out_ch

    x = jax.random.normal(keys[0], (N, Cin, H, W), dtype=jnp.float32)
    w1 = jax.random.normal(keys[1], (Cmid, Cin, 3, 3), dtype=jnp.float32) * 0.1
    w2 = jax.random.normal(keys[2], (Cout, Cmid, 3, 3), dtype=jnp.float32) * 0.1
    g1 = 1.0 + 0.1 * jax.random.normal(keys[3], (Cmid,), dtype=jnp.float32)
    b1 = 0.1 * jax.random.normal(keys[4], (Cmid,), dtype=jnp.float32)
    g2 = 1.0 + 0.1 * jax.random.normal(keys[5], (Cout,), dtype=jnp.float32)
    b2 = 0.1 * jax.random.normal(keys[6], (Cout,), dtype=jnp.float32)

    out = jax.block_until_ready(double_conv(x, w1, g1, b1, w2, g2, b2, residual=False))
    ref = _reference(x, w1, g1, b1, w2, g2, b2, residual=False)
    assert out.shape == (N, Cout, H, W), out.shape
    err = float(jnp.max(jnp.abs(out - ref)))
    assert jnp.allclose(out, ref, atol=5e-2, rtol=5e-2), err   # bf16 MXU operands, f32 accum

    # --- residual DoubleConv (requires in_ch == out_ch), as used inside Down/Up ---
    Cr = 8
    x_r = jax.random.normal(keys[7], (N, Cr, H, W), dtype=jnp.float32)
    w1_r = jax.random.normal(keys[8], (Cr, Cr, 3, 3), dtype=jnp.float32) * 0.1
    w2_r = jax.random.normal(keys[9], (Cr, Cr, 3, 3), dtype=jnp.float32) * 0.1
    g1_r = 1.0 + 0.1 * jax.random.normal(keys[10], (Cr,), dtype=jnp.float32)
    b1_r = 0.1 * jax.random.normal(keys[11], (Cr,), dtype=jnp.float32)
    g2_r = 1.0 + 0.1 * jax.random.normal(keys[12], (Cr,), dtype=jnp.float32)
    b2_r = 0.1 * jax.random.normal(keys[13], (Cr,), dtype=jnp.float32)

    out_r = jax.block_until_ready(
        double_conv(x_r, w1_r, g1_r, b1_r, w2_r, g2_r, b2_r, residual=True))
    ref_r = _reference(x_r, w1_r, g1_r, b1_r, w2_r, g2_r, b2_r, residual=True)
    assert out_r.shape == (N, Cr, H, W), out_r.shape
    err_r = float(jnp.max(jnp.abs(out_r - ref_r)))
    assert jnp.allclose(out_r, ref_r, atol=5e-2, rtol=5e-2), err_r

    print("KERNEL_OK")
</pallas_src>

<mosaic_0001>
module attributes {stable_mosaic.version = 11 : i64} {
  func.func @_double_conv_kernel(%arg0: i32, %arg1: memref<1x4x256xf32, #tpu.memory_space<vmem>>, %arg2: memref<3x3x8x4xbf16, #tpu.memory_space<vmem>>, %arg3: memref<8x1xf32, #tpu.memory_space<vmem>>, %arg4: memref<8x1xf32, #tpu.memory_space<vmem>>, %arg5: memref<3x3x8x8xbf16, #tpu.memory_space<vmem>>, %arg6: memref<8x1xf32, #tpu.memory_space<vmem>>, %arg7: memref<8x1xf32, #tpu.memory_space<vmem>>, %arg8: memref<1x256xi32, #tpu.memory_space<vmem>>, %arg9: memref<1x8x256xf32, #tpu.memory_space<vmem>>, %arg10: memref<4x290xf32, #tpu.memory_space<vmem>>, %arg11: memref<8x290xf32, #tpu.memory_space<vmem>>) attributes {dimension_semantics = [#tpu.dimension_semantics<parallel>], iteration_bounds = array<i64: 2>, scalar_prefetch = 0 : i64, scratch_operands = 2 : i64, tpu.core_type = #tpu.core_type<tc>, window_params = [{transform_indices = @transform_0, window_bounds = array<i64: 1, 4, 256>}, {pipeline_mode = #tpu.pipeline_mode<synchronous>, transform_indices = @transform_1, window_bounds = array<i64: 3, 3, 8, 4>}, {pipeline_mode = #tpu.pipeline_mode<synchronous>, transform_indices = @transform_2, window_bounds = array<i64: 8, 1>}, {pipeline_mode = #tpu.pipeline_mode<synchronous>, transform_indices = @transform_3, window_bounds = array<i64: 8, 1>}, {pipeline_mode = #tpu.pipeline_mode<synchronous>, transform_indices = @transform_4, window_bounds = array<i64: 3, 3, 8, 8>}, {pipeline_mode = #tpu.pipeline_mode<synchronous>, transform_indices = @transform_5, window_bounds = array<i64: 8, 1>}, {pipeline_mode = #tpu.pipeline_mode<synchronous>, transform_indices = @transform_6, window_bounds = array<i64: 8, 1>}, {pipeline_mode = #tpu.pipeline_mode<synchronous>, transform_indices = @transform_7, window_bounds = array<i64: 1, 256>}, {transform_indices = @transform_8, window_bounds = array<i64: 1, 8, 256>}]} {
    %c0 = arith.constant 0 : index
    %c0_0 = arith.constant 0 : index
    %0 = vector.load %arg8[%c0, %c0_0] : memref<1x256xi32, #tpu.memory_space<vmem>>, vector<1x256xi32>
    %c0_i32 = arith.constant 0 : i32
    %1 = vector.broadcast %c0_i32 : i32 to vector<1x256xi32>
    %2 = arith.cmpi sgt, %0, %1 : vector<1x256xi32>
    %c15_i32 = arith.constant 15 : i32
    %3 = vector.broadcast %c15_i32 : i32 to vector<1x256xi32>
    %4 = arith.cmpi slt, %0, %3 : vector<1x256xi32>
    %cst = arith.constant 0.000000e+00 : f32
    %5 = vector.broadcast %cst : f32 to vector<4x17xf32>
    %c0_1 = arith.constant 0 : index
    %c0_2 = arith.constant 0 : index
    %6 = vector.load %arg10[%c0_1, %c0_2] : memref<4x290xf32, #tpu.memory_space<vmem>>, vector<4x17xf32>
    tpu.vector_store %arg10[%c0_1, %c0_2], %5 {strides = array<i32>} : memref<4x290xf32, #tpu.memory_space<vmem>>, vector<4x17xf32>,
    %c0_3 = arith.constant 0 : index
    %c273 = arith.constant 273 : index
    %7 = vector.load %arg10[%c0_3, %c273] : memref<4x290xf32, #tpu.memory_space<vmem>>, vector<4x17xf32>
    tpu.vector_store %arg10[%c0_3, %c273], %5 {strides = array<i32>} : memref<4x290xf32, #tpu.memory_space<vmem>>, vector<4x17xf32>,
    %cst_4 = arith.constant 0.000000e+00 : f32
    %8 = vector.broadcast %cst_4 : f32 to vector<8x17xf32>
    %c0_5 = arith.constant 0 : index
    %c0_6 = arith.constant 0 : index
    %9 = vector.load %arg11[%c0_5, %c0_6] : memref<8x290xf32, #tpu.memory_space<vmem>>, vector<8x17xf32>
    tpu.vector_store %arg11[%c0_5, %c0_6], %8 {strides = array<i32>} : memref<8x290xf32, #tpu.memory_space<vmem>>, vector<8x17xf32>,
    %c0_7 = arith.constant 0 : index
    %c273_8 = arith.constant 273 : index
    %10 = vector.load %arg11[%c0_7, %c273_8] : memref<8x290xf32, #tpu.memory_space<vmem>>, vector<8x17xf32>
    tpu.vector_store %arg11[%c0_7, %c273_8], %8 {strides = array<i32>} : memref<8x290xf32, #tpu.memory_space<vmem>>, vector<8x17xf32>,
    %c0_9 = arith.constant 0 : index
    %c0_10 = arith.constant 0 : index
    %c0_11 = arith.constant 0 : index
    %11 = vector.load %arg1[%c0_9, %c0_10, %c0_11] : memref<1x4x256xf32, #tpu.memory_space<vmem>>, vector<1x4x256xf32>
    %12 = vector.shape_cast %11 : vector<1x4x256xf32> to vector<4x256xf32>
    %c0_12 = arith.constant 0 : index
    %c17 = arith.constant 17 : index
    %13 = vector.load %arg10[%c0_12, %c17] : memref<4x290xf32, #tpu.memory_space<vmem>>, vector<4x256xf32>
    tpu.vector_store %arg10[%c0_12, %c17], %12 {strides = array<i32>} : memref<4x290xf32, #tpu.memory_space<vmem>>, vector<4x256xf32>,
    %cst_13 = arith.constant 0.000000e+00 : f32
    %14 = vector.broadcast %cst_13 : f32 to vector<8x256xf32>
    %c0_14 = arith.constant 0 : index
    %c0_15 = arith.constant 0 : index
    %15 = vector.load %arg10[%c0_14, %c0_15] : memref<4x290xf32, #tpu.memory_space<vmem>>, vector<4x256xf32>
    %cst_16 = arith.constant 0.000000e+00 : f32
    %16 = vector.shape_cast %2 : vector<1x256xi1> to vector<1x256xi1>
    %17 = vector.broadcast %16 : vector<1x256xi1> to vector<4x256xi1>
    %18 = vector.broadcast %cst_16 : f32 to vector<4x256xf32>
    %19 = arith.select %17, %15, %18 : vector<4x256xi1>, vector<4x256xf32>
    %c0_17 = arith.constant 0 : index
    %c0_18 = arith.constant 0 : index
    %c0_19 = arith.constant 0 : index
    %c0_20 = arith.constant 0 : index
    %20 = vector.load %arg2[%c0_17, %c0_18, %c0_19, %c0_20] : memref<3x3x8x4xbf16, #tpu.memory_space<vmem>>, vector<1x1x8x4xbf16>
    %21 = vector.shape_cast %20 : vector<1x1x8x4xbf16> to vector<8x4xbf16>
    %22 = arith.truncf %19 : vector<4x256xf32> to vector<4x256xbf16>
    %cst_21 = arith.constant dense<0.000000e+00> : vector<8x256xf32>
    %23 = tpu.matmul %21, %22, %cst_21 {dimension_numbers = #tpu.dot_dimension_numbers<[1], [0], [0], [1], [0, 0, 1, 1], [], []>} : vector<8x4xbf16>, vector<4x256xbf16>, vector<8x256xf32> -> vector<8x256xf32>
    %24 = arith.addf %14, %23 : vector<8x256xf32>
    %c0_22 = arith.constant 0 : index
    %c1 = arith.constant 1 : index
    %25 = vector.load %arg10[%c0_22, %c1] : memref<4x290xf32, #tpu.memory_space<vmem>>, vector<4x256xf32>
    %c0_23 = arith.constant 0 : index
    %c1_24 = arith.constant 1 : index
    %c0_25 = arith.constant 0 : index
    %c0_26 = arith.constant 0 : index
    %26 = vector.load %arg2[%c0_23, %c1_24, %c0_25, %c0_26] : memref<3x3x8x4xbf16, #tpu.memory_space<vmem>>, vector<1x1x8x4xbf16>
    %27 = vector.shape_cast %26 : vector<1x1x8x4xbf16> to vector<8x4xbf16>
    %28 = arith.truncf %25 : vector<4x256xf32> to vector<4x256xbf16>
    %cst_27 = arith.constant dense<0.000000e+00> : vector<8x256xf32>
    %29 = tpu.matmul %27, %28, %cst_27 {dimension_numbers = #tpu.dot_dimension_numbers<[1], [0], [0], [1], [0, 0, 1, 1], [], []>} : vector<8x4xbf16>, vector<4x256xbf16>, vector<8x256xf32> -> vector<8x256xf32>
    %30 = arith.addf %24, %29 : vector<8x256xf32>
    %c0_28 = arith.constant 0 : index
    %c2 = arith.constant 2 : index
    %31 = vector.load %arg10[%c0_28, %c2] : memref<4x290xf32, #tpu.memory_space<vmem>>, vector<4x256xf32>
    %cst_29 = arith.constant 0.000000e+00 : f32
    %32 = vector.shape_cast %4 : vector<1x256xi1> to vector<1x256xi1>
    %33 = vector.broadcast %32 : vector<1x256xi1> to vector<4x256xi1>
    %34 = vector.broadcast %cst_29 : f32 to vector<4x256xf32>
    %35 = arith.select %33, %31, %34 : vector<4x256xi1>, vector<4x256xf32>
    %c0_30 = arith.constant 0 : index
    %c2_31 = arith.constant 2 : index
    %c0_32 = arith.constant 0 : index
    %c0_33 = arith.constant 0 : index
    %36 = vector.load %arg2[%c0_30, %c2_31, %c0_32, %c0_33] : memref<3x3x8x4xbf16, #tpu.memory_space<vmem>>, vector<1x1x8x4xbf16>
    %37 = vector.shape_cast %36 : vector<1x1x8x4xbf16> to vector<8x4xbf16>
    %38 = arith.truncf %35 : vector<4x256xf32> to vector<4x256xbf16>
    %cst_34 = arith.constant dense<0.000000e+00> : vector<8x256xf32>
    %39 = tpu.matmul %37, %38, %cst_34 {dimension_numbers = #tpu.dot_dimension_numbers<[1], [0], [0], [1], [0, 0, 1, 1], [], []>} : vector<8x4xbf16>, vector<4x256xbf16>, vector<8x256xf32> -> vector<8x256xf32>
    %40 = arith.addf %30, %39 : vector<8x256xf32>
    %c0_35 = arith.constant 0 : index
    %c16 = arith.constant 16 : index
    %41 = vector.load %arg10[%c0_35, %c16] : memref<4x290xf32, #tpu.memory_space<vmem>>, vector<4x256xf32>
    %cst_36 = arith.constant 0.000000e+00 : f32
    %42 = vector.shape_cast %2 : vector<1x256xi1> to vector<1x256xi1>
    %43 = vector.broadcast %42 : vector<1x256xi1> to vector<4x256xi1>
    %44 = vector.broadcast %cst_36 : f32 to vector<4x256xf32>
    %45 = arith.select %43, %41, %44 : vector<4x256xi1>, vector<4x256xf32>
    %c1_37 = arith.constant 1 : index
    %c0_38 = arith.constant 0 : index
    %c0_39 = arith.constant 0 : index
    %c0_40 = arith.constant 0 : index
    %46 = vector.load %arg2[%c1_37, %c0_38, %c0_39, %c0_40] : memref<3x3x8x4xbf16, #tpu.memory_space<vmem>>, vector<1x1x8x4xbf16>
    %47 = vector.shape_cast %46 : vector<1x1x8x4xbf16> to vector<8x4xbf16>
    %48 = arith.truncf %45 : vector<4x256xf32> to vector<4x256xbf16>
    %cst_41 = arith.constant dense<0.000000e+00> : vector<8x256xf32>
    %49 = tpu.matmul %47, %48, %cst_41 {dimension_numbers = #tpu.dot_dimension_numbers<[1], [0], [0], [1], [0, 0, 1, 1], [], []>} : vector<8x4xbf16>, vector<4x256xbf16>, vector<8x256xf32> -> vector<8x256xf32>
    %50 = arith.addf %40, %49 : vector<8x256xf32>
    %c0_42 = arith.constant 0 : index
    %c17_43 = arith.constant 17 : index
    %51 = vector.load %arg10[%c0_42, %c17_43] : memref<4x290xf32, #tpu.memory_space<vmem>>, vector<4x256xf32>
    %c1_44 = arith.constant 1 : index
    %c1_45 = arith.constant 1 : index
    %c0_46 = arith.constant 0 : index
    %c0_47 = arith.constant 0 : index
    %52 = vector.load %arg2[%c1_44, %c1_45, %c0_46, %c0_47] : memref<3x3x8x4xbf16, #tpu.memory_space<vmem>>, vector<1x1x8x4xbf16>
    %53 = vector.shape_cast %52 : vector<1x1x8x4xbf16> to vector<8x4xbf16>
    %54 = arith.truncf %51 : vector<4x256xf32> to vector<4x256xbf16>
    %cst_48 = arith.constant dense<0.000000e+00> : vector<8x256xf32>
    %55 = tpu.matmul %53, %54, %cst_48 {dimension_numbers = #tpu.dot_dimension_numbers<[1], [0], [0], [1], [0, 0, 1, 1], [], []>} : vector<8x4xbf16>, vector<4x256xbf16>, vector<8x256xf32> -> vector<8x256xf32>
    %56 = arith.addf %50, %55 : vector<8x256xf32>
    %c0_49 = arith.constant 0 : index
    %c18 = arith.constant 18 : index
    %57 = vector.load %arg10[%c0_49, %c18] : memref<4x290xf32, #tpu.memory_space<vmem>>, vector<4x256xf32>
    %cst_50 = arith.constant 0.000000e+00 : f32
    %58 = vector.shape_cast %4 : vector<1x256xi1> to vector<1x256xi1>
    %59 = vector.broadcast %58 : vector<1x256xi1> to vector<4x256xi1>
    %60 = vector.broadcast %cst_50 : f32 to vector<4x256xf32>
    %61 = arith.select %59, %57, %60 : vector<4x256xi1>, vector<4x256xf32>
    %c1_51 = arith.constant 1 : index
    %c2_52 = arith.constant 2 : index
    %c0_53 = arith.constant 0 : index
    %c0_54 = arith.constant 0 : index
    %62 = vector.load %arg2[%c1_51, %c2_52, %c0_53, %c0_54] : memref<3x3x8x4xbf16, #tpu.memory_space<vmem>>, vector<1x1x8x4xbf16>
    %63 = vector.shape_cast %62 : vector<1x1x8x4xbf16> to vector<8x4xbf16>
    %64 = arith.truncf %61 : vector<4x256xf32> to vector<4x256xbf16>
    %cst_55 = arith.constant dense<0.000000e+00> : vector<8x256xf32>
    %65 = tpu.matmul %63, %64, %cst_55 {dimension_numbers = #tpu.dot_dimension_numbers<[1], [0], [0], [1], [0, 0, 1, 1], [], []>} : vector<8x4xbf16>, vector<4x256xbf16>, vector<8x256xf32> -> vector<8x256xf32>
    %66 = arith.addf %56, %65 : vector<8x256xf32>
    %c0_56 = arith.constant 0 : index
    %c32 = arith.constant 32 : index
    %67 = vector.load %arg10[%c0_56, %c32] : memref<4x290xf32, #tpu.memory_space<vmem>>, vector<4x256xf32>
    %cst_57 = arith.constant 0.000000e+00 : f32
    %68 = vector.shape_cast %2 : vector<1x256xi1> to vector<1x256xi1>
    %69 = vector.broadcast %68 : vector<1x256xi1> to vector<4x256xi1>
    %70 = vector.broadcast %cst_57 : f32 to vector<4x256xf32>
    %71 = arith.select %69, %67, %70 : vector<4x256xi1>, vector<4x256xf32>
    %c2_58 = arith.constant 2 : index
    %c0_59 = arith.constant 0 : index
    %c0_60 = arith.constant 0 : index
    %c0_61 = arith.constant 0 : index
    %72 = vector.load %arg2[%c2_58, %c0_59, %c0_60, %c0_61] : memref<3x3x8x4xbf16, #tpu.memory_space<vmem>>, vector<1x1x8x4xbf16>
    %73 = vector.shape_cast %72 : vector<1x1x8x4xbf16> to vector<8x4xbf16>
    %74 = arith.truncf %71 : vector<4x256xf32> to vector<4x256xbf16>
    %cst_62 = arith.constant dense<0.000000e+00> : vector<8x256xf32>
    %75 = tpu.matmul %73, %74, %cst_62 {dimension_numbers = #tpu.dot_dimension_numbers<[1], [0], [0], [1], [0, 0, 1, 1], [], []>} : vector<8x4xbf16>, vector<4x256xbf16>, vector<8x256xf32> -> vector<8x256xf32>
    %76 = arith.addf %66, %75 : vector<8x256xf32>
    %c0_63 = arith.constant 0 : index
    %c33 = arith.constant 33 : index
    %77 = vector.load %arg10[%c0_63, %c33] : memref<4x290xf32, #tpu.memory_space<vmem>>, vector<4x256xf32>
    %c2_64 = arith.constant 2 : index
    %c1_65 = arith.constant 1 : index
    %c0_66 = arith.constant 0 : index
    %c0_67 = arith.constant 0 : index
    %78 = vector.load %arg2[%c2_64, %c1_65, %c0_66, %c0_67] : memref<3x3x8x4xbf16, #tpu.memory_space<vmem>>, vector<1x1x8x4xbf16>
    %79 = vector.shape_cast %78 : vector<1x1x8x4xbf16> to vector<8x4xbf16>
    %80 = arith.truncf %77 : vector<4x256xf32> to vector<4x256xbf16>
    %cst_68 = arith.constant dense<0.000000e+00> : vector<8x256xf32>
    %81 = tpu.matmul %79, %80, %cst_68 {dimension_numbers = #tpu.dot_dimension_numbers<[1], [0], [0], [1], [0, 0, 1, 1], [], []>} : vector<8x4xbf16>, vector<4x256xbf16>, vector<8x256xf32> -> vector<8x256xf32>
    %82 = arith.addf %76, %81 : vector<8x256xf32>
    %c0_69 = arith.constant 0 : index
    %c34 = arith.constant 34 : index
    %83 = vector.load %arg10[%c0_69, %c34] : memref<4x290xf32, #tpu.memory_space<vmem>>, vector<4x256xf32>
    %cst_70 = arith.constant 0.000000e+00 : f32
    %84 = vector.shape_cast %4 : vector<1x256xi1> to vector<1x256xi1>
    %85 = vector.broadcast %84 : vector<1x256xi1> to vector<4x256xi1>
    %86 = vector.broadcast %cst_70 : f32 to vector<4x256xf32>
    %87 = arith.select %85, %83, %86 : vector<4x256xi1>, vector<4x256xf32>
    %c2_71 = arith.constant 2 : index
    %c2_72 = arith.constant 2 : index
    %c0_73 = arith.constant 0 : index
    %c0_74 = arith.constant 0 : index
    %88 = vector.load %arg2[%c2_71, %c2_72, %c0_73, %c0_74] : memref<3x3x8x4xbf16, #tpu.memory_space<vmem>>, vector<1x1x8x4xbf16>
    %89 = vector.shape_cast %88 : vector<1x1x8x4xbf16> to vector<8x4xbf16>
    %90 = arith.truncf %87 : vector<4x256xf32> to vector<4x256xbf16>
    %cst_75 = arith.constant dense<0.000000e+00> : vector<8x256xf32>
    %91 = tpu.matmul %89, %90, %cst_75 {dimension_numbers = #tpu.dot_dimension_numbers<[1], [0], [0], [1], [0, 0, 1, 1], [], []>} : vector<8x4xbf16>, vector<4x256xbf16>, vector<8x256xf32> -> vector<8x256xf32>
    %92 = arith.addf %82, %91 : vector<8x256xf32>
    %93 = vector.shape_cast %92 : vector<8x256xf32> to vector<1x8x256xf32>
    %cst_76 = arith.constant dense<0.000000e+00> : vector<1xf32>
    %94 = vector.multi_reduction <add>, %93, %cst_76 [1, 2] : vector<1x8x256xf32> to vector<1xf32>
    %95 = vector.shape_cast %94 : vector<1xf32> to vector<1x1x1xf32>
    %96 = vector.extract %95[0, 0, 0] : f32 from vector<1x1x1xf32>
    %97 = arith.mulf %92, %92 : vector<8x256xf32>
    %98 = vector.shape_cast %97 : vector<8x256xf32> to vector<1x8x256xf32>
    %cst_77 = arith.constant dense<0.000000e+00> : vector<1xf32>
    %99 = vector.multi_reduction <add>, %98, %cst_77 [1, 2] : vector<1x8x256xf32> to vector<1xf32>
    %100 = vector.shape_cast %99 : vector<1xf32> to vector<1x1x1xf32>
    %101 = vector.extract %100[0, 0, 0] : f32 from vector<1x1x1xf32>
    %cst_78 = arith.constant 2.048000e+03 : f32
    %102 = arith.divf %96, %cst_78 : f32
    %cst_79 = arith.constant 2.048000e+03 : f32
    %103 = arith.divf %101, %cst_79 : f32
    %104 = arith.mulf %102, %102 : f32
    %105 = arith.subf %103, %104 : f32
    %106 = vector.broadcast %102 : f32 to vector<8x256xf32>
    %107 = arith.subf %92, %106 : vector<8x256xf32>
    %cst_80 = arith.constant 9.99999974E-6 : f32
    %108 = arith.addf %105, %cst_80 : f32
    %109 = math.rsqrt %108 : f32
    %110 = vector.broadcast %109 : f32 to vector<8x256xf32>
    %111 = arith.mulf %107, %110 : vector<8x256xf32>
    %c0_81 = arith.constant 0 : index
    %c0_82 = arith.constant 0 : index
    %112 = vector.load %arg3[%c0_81, %c0_82] : memref<8x1xf32, #tpu.memory_space<vmem>>, vector<8x1xf32>
    %113 = vector.broadcast %112 : vector<8x1xf32> to vector<8x256xf32>
    %114 = arith.mulf %111, %113 : vector<8x256xf32>
    %c0_83 = arith.constant 0 : index
    %c0_84 = arith.constant 0 : index
    %115 = vector.load %arg4[%c0_83, %c0_84] : memref<8x1xf32, #tpu.memory_space<vmem>>, vector<8x1xf32>
    %116 = vector.broadcast %115 : vector<8x1xf32> to vector<8x256xf32>
    %117 = arith.addf %114, %116 : vector<8x256xf32>
    %cst_85 = arith.constant 5.000000e-01 : f32
    %118 = vector.broadcast %cst_85 : f32 to vector<8x256xf32>
    %119 = arith.mulf %118, %117 : vector<8x256xf32>
    %cst_86 = arith.constant 0.707106769 : f32
    %120 = vector.broadcast %cst_86 : f32 to vector<8x256xf32>
    %121 = arith.mulf %117, %120 : vector<8x256xf32>
    %122 = math.erf %121 : vector<8x256xf32>
    %cst_87 = arith.constant 1.000000e+00 : f32
    %123 = vector.broadcast %cst_87 : f32 to vector<8x256xf32>
    %124 = arith.addf %123, %122 : vector<8x256xf32>
    %125 = arith.mulf %119, %124 : vector<8x256xf32>
    %c0_88 = arith.constant 0 : index
    %c17_89 = arith.constant 17 : index
    %126 = vector.load %arg11[%c0_88, %c17_89] : memref<8x290xf32, #tpu.memory_space<vmem>>, vector<8x256xf32>
    tpu.vector_store %arg11[%c0_88, %c17_89], %125 {strides = array<i32>} : memref<8x290xf32, #tpu.memory_space<vmem>>, vector<8x256xf32>,
    %cst_90 = arith.constant 0.000000e+00 : f32
    %127 = vector.broadcast %cst_90 : f32 to vector<8x256xf32>
    %c0_91 = arith.constant 0 : index
    %c0_92 = arith.constant 0 : index
    %128 = vector.load %arg11[%c0_91, %c0_92] : memref<8x290xf32, #tpu.memory_space<vmem>>, vector<8x256xf32>
    %cst_93 = arith.constant 0.000000e+00 : f32
    %129 = vector.shape_cast %2 : vector<1x256xi1> to vector<1x256xi1>
    %130 = vector.broadcast %129 : vector<1x256xi1> to vector<8x256xi1>
    %131 = vector.broadcast %cst_93 : f32 to vector<8x256xf32>
    %132 = arith.select %130, %128, %131 : vector<8x256xi1>, vector<8x256xf32>
    %c0_94 = arith.constant 0 : index
    %c0_95 = arith.constant 0 : index
    %c0_96 = arith.constant 0 : index
    %c0_97 = arith.constant 0 : index
    %133 = vector.load %arg5[%c0_94, %c0_95, %c0_96, %c0_97] : memref<3x3x8x8xbf16, #tpu.memory_space<vmem>>, vector<1x1x8x8xbf16>
    %134 = vector.shape_cast %133 : vector<1x1x8x8xbf16> to vector<8x8xbf16>
    %135 = arith.truncf %132 : vector<8x256xf32> to vector<8x256xbf16>
    %cst_98 = arith.constant dense<0.000000e+00> : vector<8x256xf32>
    %136 = tpu.matmul %134, %135, %cst_98 {dimension_numbers = #tpu.dot_dimension_numbers<[1], [0], [0], [1], [0, 0, 1, 1], [], []>} : vector<8x8xbf16>, vector<8x256xbf16>, vector<8x256xf32> -> vector<8x256xf32>
    %137 = arith.addf %127, %136 : vector<8x256xf32>
    %c0_99 = arith.constant 0 : index
    %c1_100 = arith.constant 1 : index
    %138 = vector.load %arg11[%c0_99, %c1_100] : memref<8x290xf32, #tpu.memory_space<vmem>>, vector<8x256xf32>
    %c0_101 = arith.constant 0 : index
    %c1_102 = arith.constant 1 : index
    %c0_103 = arith.constant 0 : index
    %c0_104 = arith.constant 0 : index
    %139 = vector.load %arg5[%c0_101, %c1_102, %c0_103, %c0_104] : memref<3x3x8x8xbf16, #tpu.memory_space<vmem>>, vector<1x1x8x8xbf16>
    %140 = vector.shape_cast %139 : vector<1x1x8x8xbf16> to vector<8x8xbf16>
    %141 = arith.truncf %138 : vector<8x256xf32> to vector<8x256xbf16>
    %cst_105 = arith.constant dense<0.000000e+00> : vector<8x256xf32>
    %142 = tpu.matmul %140, %141, %cst_105 {dimension_numbers = #tpu.dot_dimension_numbers<[1], [0], [0], [1], [0, 0, 1, 1], [], []>} : vector<8x8xbf16>, vector<8x256xbf16>, vector<8x256xf32> -> vector<8x256xf32>
    %143 = arith.addf %137, %142 : vector<8x256xf32>
    %c0_106 = arith.constant 0 : index
    %c2_107 = arith.constant 2 : index
    %144 = vector.load %arg11[%c0_106, %c2_107] : memref<8x290xf32, #tpu.memory_space<vmem>>, vector<8x256xf32>
    %cst_108 = arith.constant 0.000000e+00 : f32
    %145 = vector.shape_cast %4 : vector<1x256xi1> to vector<1x256xi1>
    %146 = vector.broadcast %145 : vector<1x256xi1> to vector<8x256xi1>
    %147 = vector.broadcast %cst_108 : f32 to vector<8x256xf32>
    %148 = arith.select %146, %144, %147 : vector<8x256xi1>, vector<8x256xf32>
    %c0_109 = arith.constant 0 : index
    %c2_110 = arith.constant 2 : index
    %c0_111 = arith.constant 0 : index
    %c0_112 = arith.constant 0 : index
    %149 = vector.load %arg5[%c0_109, %c2_110, %c0_111, %c0_112] : memref<3x3x8x8xbf16, #tpu.memory_space<vmem>>, vector<1x1x8x8xbf16>
    %150 = vector.shape_cast %149 : vector<1x1x8x8xbf16> to vector<8x8xbf16>
    %151 = arith.truncf %148 : vector<8x256xf32> to vector<8x256xbf16>
    %cst_113 = arith.constant dense<0.000000e+00> : vector<8x256xf32>
    %152 = tpu.matmul %150, %151, %cst_113 {dimension_numbers = #tpu.dot_dimension_numbers<[1], [0], [0], [1], [0, 0, 1, 1], [], []>} : vector<8x8xbf16>, vector<8x256xbf16>, vector<8x256xf32> -> vector<8x256xf32>
    %153 = arith.addf %143, %152 : vector<8x256xf32>
    %c0_114 = arith.constant 0 : index
    %c16_115 = arith.constant 16 : index
    %154 = vector.load %arg11[%c0_114, %c16_115] : memref<8x290xf32, #tpu.memory_space<vmem>>, vector<8x256xf32>
    %cst_116 = arith.constant 0.000000e+00 : f32
    %155 = vector.shape_cast %2 : vector<1x256xi1> to vector<1x256xi1>
    %156 = vector.broadcast %155 : vector<1x256xi1> to vector<8x256xi1>
    %157 = vector.broadcast %cst_116 : f32 to vector<8x256xf32>
    %158 = arith.select %156, %154, %157 : vector<8x256xi1>, vector<8x256xf32>
    %c1_117 = arith.constant 1 : index
    %c0_118 = arith.constant 0 : index
    %c0_119 = arith.constant 0 : index
    %c0_120 = arith.constant 0 : index
    %159 = vector.load %arg5[%c1_117, %c0_118, %c0_119, %c0_120] : memref<3x3x8x8xbf16, #tpu.memory_space<vmem>>, vector<1x1x8x8xbf16>
    %160 = vector.shape_cast %159 : vector<1x1x8x8xbf16> to vector<8x8xbf16>
    %161 = arith.truncf %158 : vector<8x256xf32> to vector<8x256xbf16>
    %cst_121 = arith.constant dense<0.000000e+00> : vector<8x256xf32>
    %162 = tpu.matmul %160, %161, %cst_121 {dimension_numbers = #tpu.dot_dimension_numbers<[1], [0], [0], [1], [0, 0, 1, 1], [], []>} : vector<8x8xbf16>, vector<8x256xbf16>, vector<8x256xf32> -> vector<8x256xf32>
    %163 = arith.addf %153, %162 : vector<8x256xf32>
    %c0_122 = arith.constant 0 : index
    %c17_123 = arith.constant 17 : index
    %164 = vector.load %arg11[%c0_122, %c17_123] : memref<8x290xf32, #tpu.memory_space<vmem>>, vector<8x256xf32>
    %c1_124 = arith.constant 1 : index
    %c1_125 = arith.constant 1 : index
    %c0_126 = arith.constant 0 : index
    %c0_127 = arith.constant 0 : index
    %165 = vector.load %arg5[%c1_124, %c1_125, %c0_126, %c0_127] : memref<3x3x8x8xbf16, #tpu.memory_space<vmem>>, vector<1x1x8x8xbf16>
    %166 = vector.shape_cast %165 : vector<1x1x8x8xbf16> to vector<8x8xbf16>
    %167 = arith.truncf %164 : vector<8x256xf32> to vector<8x256xbf16>
    %cst_128 = arith.constant dense<0.000000e+00> : vector<8x256xf32>
    %168 = tpu.matmul %166, %167, %cst_128 {dimension_numbers = #tpu.dot_dimension_numbers<[1], [0], [0], [1], [0, 0, 1, 1], [], []>} : vector<8x8xbf16>, vector<8x256xbf16>, vector<8x256xf32> -> vector<8x256xf32>
    %169 = arith.addf %163, %168 : vector<8x256xf32>
    %c0_129 = arith.constant 0 : index
    %c18_130 = arith.constant 18 : index
    %170 = vector.load %arg11[%c0_129, %c18_130] : memref<8x290xf32, #tpu.memory_space<vmem>>, vector<8x256xf32>
    %cst_131 = arith.constant 0.000000e+00 : f32
    %171 = vector.shape_cast %4 : vector<1x256xi1> to vector<1x256xi1>
    %172 = vector.broadcast %171 : vector<1x256xi1> to vector<8x256xi1>
    %173 = vector.broadcast %cst_131 : f32 to vector<8x256xf32>
    %174 = arith.select %172, %170, %173 : vector<8x256xi1>, vector<8x256xf32>
    %c1_132 = arith.constant 1 : index
    %c2_133 = arith.constant 2 : index
    %c0_134 = arith.constant 0 : index
    %c0_135 = arith.constant 0 : index
    %175 = vector.load %arg5[%c1_132, %c2_133, %c0_134, %c0_135] : memref<3x3x8x8xbf16, #tpu.memory_space<vmem>>, vector<1x1x8x8xbf16>
    %176 = vector.shape_cast %175 : vector<1x1x8x8xbf16> to vector<8x8xbf16>
    %177 = arith.truncf %174 : vector<8x256xf32> to vector<8x256xbf16>
    %cst_136 = arith.constant dense<0.000000e+00> : vector<8x256xf32>
    %178 = tpu.matmul %176, %177, %cst_136 {dimension_numbers = #tpu.dot_dimension_numbers<[1], [0], [0], [1], [0, 0, 1, 1], [], []>} : vector<8x8xbf16>, vector<8x256xbf16>, vector<8x256xf32> -> vector<8x256xf32>
    %179 = arith.addf %169, %178 : vector<8x256xf32>
    %c0_137 = arith.constant 0 : index
    %c32_138 = arith.constant 32 : index
    %180 = vector.load %arg11[%c0_137, %c32_138] : memref<8x290xf32, #tpu.memory_space<vmem>>, vector<8x256xf32>
    %cst_139 = arith.constant 0.000000e+00 : f32
    %181 = vector.shape_cast %2 : vector<1x256xi1> to vector<1x256xi1>
    %182 = vector.broadcast %181 : vector<1x256xi1> to vector<8x256xi1>
    %183 = vector.broadcast %cst_139 : f32 to vector<8x256xf32>
    %184 = arith.select %182, %180, %183 : vector<8x256xi1>, vector<8x256xf32>
    %c2_140 = arith.constant 2 : index
    %c0_141 = arith.constant 0 : index
    %c0_142 = arith.constant 0 : index
    %c0_143 = arith.constant 0 : index
    %185 = vector.load %arg5[%c2_140, %c0_141, %c0_142, %c0_143] : memref<3x3x8x8xbf16, #tpu.memory_space<vmem>>, vector<1x1x8x8xbf16>
    %186 = vector.shape_cast %185 : vector<1x1x8x8xbf16> to vector<8x8xbf16>
    %187 = arith.truncf %184 : vector<8x256xf32> to vector<8x256xbf16>
    %cst_144 = arith.constant dense<0.000000e+00> : vector<8x256xf32>
    %188 = tpu.matmul %186, %187, %cst_144 {dimension_numbers = #tpu.dot_dimension_numbers<[1], [0], [0], [1], [0, 0, 1, 1], [], []>} : vector<8x8xbf16>, vector<8x256xbf16>, vector<8x256xf32> -> vector<8x256xf32>
    %189 = arith.addf %179, %188 : vector<8x256xf32>
    %c0_145 = arith.constant 0 : index
    %c33_146 = arith.constant 33 : index
    %190 = vector.load %arg11[%c0_145, %c33_146] : memref<8x290xf32, #tpu.memory_space<vmem>>, vector<8x256xf32>
    %c2_147 = arith.constant 2 : index
    %c1_148 = arith.constant 1 : index
    %c0_149 = arith.constant 0 : index
    %c0_150 = arith.constant 0 : index
    %191 = vector.load %arg5[%c2_147, %c1_148, %c0_149, %c0_150] : memref<3x3x8x8xbf16, #tpu.memory_space<vmem>>, vector<1x1x8x8xbf16>
    %192 = vector.shape_cast %191 : vector<1x1x8x8xbf16> to vector<8x8xbf16>
    %193 = arith.truncf %190 : vector<8x256xf32> to vector<8x256xbf16>
    %cst_151 = arith.constant dense<0.000000e+00> : vector<8x256xf32>
    %194 = tpu.matmul %192, %193, %cst_151 {dimension_numbers = #tpu.dot_dimension_numbers<[1], [0], [0], [1], [0, 0, 1, 1], [], []>} : vector<8x8xbf16>, vector<8x256xbf16>, vector<8x256xf32> -> vector<8x256xf32>
    %195 = arith.addf %189, %194 : vector<8x256xf32>
    %c0_152 = arith.constant 0 : index
    %c34_153 = arith.constant 34 : index
    %196 = vector.load %arg11[%c0_152, %c34_153] : memref<8x290xf32, #tpu.memory_space<vmem>>, vector<8x256xf32>
    %cst_154 = arith.constant 0.000000e+00 : f32
    %197 = vector.shape_cast %4 : vector<1x256xi1> to vector<1x256xi1>
    %198 = vector.broadcast %197 : vector<1x256xi1> to vector<8x256xi1>
    %199 = vector.broadcast %cst_154 : f32 to vector<8x256xf32>
    %200 = arith.select %198, %196, %199 : vector<8x256xi1>, vector<8x256xf32>
    %c2_155 = arith.constant 2 : index
    %c2_156 = arith.constant 2 : index
    %c0_157 = arith.constant 0 : index
    %c0_158 = arith.constant 0 : index
    %201 = vector.load %arg5[%c2_155, %c2_156, %c0_157, %c0_158] : memref<3x3x8x8xbf16, #tpu.memory_space<vmem>>, vector<1x1x8x8xbf16>
    %202 = vector.shape_cast %201 : vector<1x1x8x8xbf16> to vector<8x8xbf16>
    %203 = arith.truncf %200 : vector<8x256xf32> to vector<8x256xbf16>
    %cst_159 = arith.constant dense<0.000000e+00> : vector<8x256xf32>
    %204 = tpu.matmul %202, %203, %cst_159 {dimension_numbers = #tpu.dot_dimension_numbers<[1], [0], [0], [1], [0, 0, 1, 1], [], []>} : vector<8x8xbf16>, vector<8x256xbf16>, vector<8x256xf32> -> vector<8x256xf32>
    %205 = arith.addf %195, %204 : vector<8x256xf32>
    %206 = vector.shape_cast %205 : vector<8x256xf32> to vector<1x8x256xf32>
    %cst_160 = arith.constant dense<0.000000e+00> : vector<1xf32>
    %207 = vector.multi_reduction <add>, %206, %cst_160 [1, 2] : vector<1x8x256xf32> to vector<1xf32>
    %208 = vector.shape_cast %207 : vector<1xf32> to vector<1x1x1xf32>
    %209 = vector.extract %208[0, 0, 0] : f32 from vector<1x1x1xf32>
    %210 = arith.mulf %205, %205 : vector<8x256xf32>
    %211 = vector.shape_cast %210 : vector<8x256xf32> to vector<1x8x256xf32>
    %cst_161 = arith.constant dense<0.000000e+00> : vector<1xf32>
    %212 = vector.multi_reduction <add>, %211, %cst_161 [1, 2] : vector<1x8x256xf32> to vector<1xf32>
    %213 = vector.shape_cast %212 : vector<1xf32> to vector<1x1x1xf32>
    %214 = vector.extract %213[0, 0, 0] : f32 from vector<1x1x1xf32>
    %cst_162 = arith.constant 2.048000e+03 : f32
    %215 = arith.divf %209, %cst_162 : f32
    %cst_163 = arith.constant 2.048000e+03 : f32
    %216 = arith.divf %214, %cst_163 : f32
    %217 = arith.mulf %215, %215 : f32
    %218 = arith.subf %216, %217 : f32
    %219 = vector.broadcast %215 : f32 to vector<8x256xf32>
    %220 = arith.subf %205, %219 : vector<8x256xf32>
    %cst_164 = arith.constant 9.99999974E-6 : f32
    %221 = arith.addf %218, %cst_164 : f32
    %222 = math.rsqrt %221 : f32
    %223 = vector.broadcast %222 : f32 to vector<8x256xf32>
    %224 = arith.mulf %220, %223 : vector<8x256xf32>
    %c0_165 = arith.constant 0 : index
    %c0_166 = arith.constant 0 : index
    %225 = vector.load %arg6[%c0_165, %c0_166] : memref<8x1xf32, #tpu.memory_space<vmem>>, vector<8x1xf32>
    %226 = vector.broadcast %225 : vector<8x1xf32> to vector<8x256xf32>
    %227 = arith.mulf %224, %226 : vector<8x256xf32>
    %c0_167 = arith.constant 0 : index
    %c0_168 = arith.constant 0 : index
    %228 = vector.load %arg7[%c0_167, %c0_168] : memref<8x1xf32, #tpu.memory_space<vmem>>, vector<8x1xf32>
    %229 = vector.broadcast %228 : vector<8x1xf32> to vector<8x256xf32>
    %230 = arith.addf %227, %229 : vector<8x256xf32>
    %c0_169 = arith.constant 0 : index
    %c0_170 = arith.constant 0 : index
    %c0_171 = arith.constant 0 : index
    %231 = vector.load %arg9[%c0_169, %c0_170, %c0_171] : memref<1x8x256xf32, #tpu.memory_space<vmem>>, vector<1x8x256xf32>
    %232 = vector.shape_cast %231 : vector<1x8x256xf32> to vector<8x256xf32>
    %233 = vector.shape_cast %230 : vector<8x256xf32> to vector<1x8x256xf32>
    tpu.vector_store %arg9[%c0_169, %c0_170, %c0_171], %233 {strides = array<i32>} : memref<1x8x256xf32, #tpu.memory_space<vmem>>, vector<1x8x256xf32>,
    return
  }
  func.func @transform_0(%arg0: i32) -> (i32, i32, i32) {
    %c0_i32 = arith.constant 0 : i32
    %c0_i32_0 = arith.constant 0 : i32
    %c0_i32_1 = arith.constant 0 : i32
    return %arg0, %c0_i32, %c0_i32_0 : i32, i32, i32
  }
  func.func @transform_1(%arg0: i32) -> (i32, i32, i32, i32) {
    %c0_i32 = arith.constant 0 : i32
    %c0_i32_0 = arith.constant 0 : i32
    %c0_i32_1 = arith.constant 0 : i32
    %c0_i32_2 = arith.constant 0 : i32
    %c0_i32_3 = arith.constant 0 : i32
    return %c0_i32, %c0_i32_0, %c0_i32_1, %c0_i32_2 : i32, i32, i32, i32
  }
  func.func @transform_2(%arg0: i32) -> (i32, i32) {
    %c0_i32 = arith.constant 0 : i32
    %c0_i32_0 = arith.constant 0 : i32
    %c0_i32_1 = arith.constant 0 : i32
    return %c0_i32, %c0_i32_0 : i32, i32
  }
  func.func @transform_3(%arg0: i32) -> (i32, i32) {
    %c0_i32 = arith.constant 0 : i32
    %c0_i32_0 = arith.constant 0 : i32
    %c0_i32_1 = arith.constant 0 : i32
    return %c0_i32, %c0_i32_0 : i32, i32
  }
  func.func @transform_4(%arg0: i32) -> (i32, i32, i32, i32) {
    %c0_i32 = arith.constant 0 : i32
    %c0_i32_0 = arith.constant 0 : i32
    %c0_i32_1 = arith.constant 0 : i32
    %c0_i32_2 = arith.constant 0 : i32
    %c0_i32_3 = arith.constant 0 : i32
    return %c0_i32, %c0_i32_0, %c0_i32_1, %c0_i32_2 : i32, i32, i32, i32
  }
  func.func @transform_5(%arg0: i32) -> (i32, i32) {
    %c0_i32 = arith.constant 0 : i32
    %c0_i32_0 = arith.constant 0 : i32
    %c0_i32_1 = arith.constant 0 : i32
    return %c0_i32, %c0_i32_0 : i32, i32
  }
  func.func @transform_6(%arg0: i32) -> (i32, i32) {
    %c0_i32 = arith.constant 0 : i32
    %c0_i32_0 = arith.constant 0 : i32
    %c0_i32_1 = arith.constant 0 : i32
    return %c0_i32, %c0_i32_0 : i32, i32
  }
  func.func @transform_7(%arg0: i32) -> (i32, i32) {
    %c0_i32 = arith.constant 0 : i32
    %c0_i32_0 = arith.constant 0 : i32
    %c0_i32_1 = arith.constant 0 : i32
    return %c0_i32, %c0_i32_0 : i32, i32
  }
  func.func @transform_8(%arg0: i32) -> (i32, i32, i32) {
    %c0_i32 = arith.constant 0 : i32
    %c0_i32_0 = arith.constant 0 : i32
    %c0_i32_1 = arith.constant 0 : i32
    return %arg0, %c0_i32, %c0_i32_0 : i32, i32, i32
  }
}

</mosaic_0001>

<bundles_post_ra>
// kernel: tpu_custom_call.1
= control target key start
LH: loop header
LB: loop body
LE: loop exit
PB: predicated region body
PF: predicated region fallthrough
CT: control target
= control target key end

     0   :  { %13 = vsyncpa [#allocation5], 0  ;;  %s2565_s0 = inlined_call_operand.vmem [shape: f32[2,4,256], index: 0, kind: input, shape index: {}]   ;;  %s2566_s1 = inlined_call_operand.vmem [shape: bf16[3,3,8,4], index: 1, kind: input, shape index: {}]   ;;  %s2567_s2 = inlined_call_operand.vmem [shape: f32[8,1], index: 2, kind: input, shape index: {}]   ;;  %s2568_s3 = inlined_call_operand.vmem [shape: f32[8,1], index: 3, kind: input, shape index: {}]   ;;  %s2569_s4 = inlined_call_operand.vmem [shape: bf16[3,3,8,8], index: 4, kind: input, shape index: {}]   ;;  %s2570_s5 = inlined_call_operand.vmem [shape: f32[8,1], index: 5, kind: input, shape index: {}]   ;;  %s2571_s6 = inlined_call_operand.vmem [shape: f32[8,1], index: 6, kind: input, shape index: {}]   ;;  %s2572_s7 = inlined_call_operand.vmem [shape: s32[1,256], index: 7, kind: input, shape index: {}]   ;;  %s2573_s8 = inlined_call_operand.hbm [shape: f32[2,8,256], index: 8, kind: output, shape index: {}]  }
   0x1   :  { %15 = vsyncpa [#allocation5 + $0x1], 0  ;;  %s2177_s27 = smov 0   ;;  %s2179_s28 = smov 0  }
   0x2   :  { %s2181_s29 = smov 0   ;;  %s2183_s30 = smov 0  }
   0x3 LB: > { %s2198_s9 = sadd.s32 4294967295, %s2118_s30   ;;  %s1803_s10 = sadd.s32 4294967294, %s2118_s30   ;;  %s2118_s30 = sphi %s2183_s30, %s2591_s30   ;;  %s2114_s29 = sphi %s2181_s29, %s2590_s29   ;;  %s2110_s28 = sphi %s2179_s28, %s2589_s28   ;;  %s2106_s27 = sphi %s2177_s27, %s2588_s27  }
   0x4   : > { %s2202_s11 = sadd.s32 1, %s2118_s30   ;;  %s201_s12 = sadd.s32 1, %s2114_s29 }
   0x5   : > { %s198_s13 = ssub.s32 %s2118_s30, %s2202_s11  ;;  %p211_p0 = scmp.ne.s32.totalorder %s2114_s29, %s2110_s28 }
   0x6   : > { %p199_p1 = scmp.eq.s32.totalorder %s198_s13, 0  ;;  %p212_p2 = scmp.eq.s32.totalorder %s2198_s9, 1 }
   0x7   : > { %p217_p3 = scmp.ne.s32.totalorder %s2110_s28, %s2106_s27  ;;  %p218_p4 = scmp.eq.s32.totalorder %s1803_s10, 1 }
   0x8   : > { %s2213_s14 = scalar_select %p199_p1, %s2114_s29, %s201_s12  }
   0x9   : > { %p2215_p5 = por %p212_p2, %p211_p0  ;;  %p2219_p6 = por %p218_p4, %p217_p3 }
   0xa   : > { %p1806_p7 = scmp.ge.s32.totalorder %s2118_s30, 1  ;;  %p265_p8 = scmp.lt.s32.totalorder %s2118_s30, 3 }
   0xc   : > { %p266_p9 = pnand %p1806_p7, %p265_p8 }
   0xd   : > { %p299_p10 = scmp.lt.s32.totalorder (!%p266_p9), %s2198_s9, 1  ;;  %vm308_vm0 = vcmask (!%p266_p9), 134144   ;;  %vm310_vm1 = vcmask (!%p266_p9), 273544   ;;  %vm312_vm2 = vcmask (!%p266_p9), 138240   ;;  %v2120_v0 = vmov (!%p266_p9), 0.0   ;;  %s2122_s22 = smov (!%p266_p9), 17  }
   0xe   : > { %269 = sbr.rel (%p266_p9) target bundleno = 1750 (0x6d6), region = 52  ;;  %309 = vst.msk [vmem:[#allocation2] sm:$0xf] (!%p266_p9), %vm308_vm0, %v2120_v0  ;;  %v2121_v1 = vmov (!%p266_p9), 0   ;;  %vm324_vm3 = vcmask (!%p266_p9), 1043592   ;;  %vm325_vm4 = vcmask (!%p266_p9), 1047556   ;;  %v331_v22 = vlaneseq (!%p266_p9) }
   0xf   : > { %311 = vst.msk [vmem:[#allocation2 + $0x8] sm:$0xf] (!%p266_p9), %vm310_vm1, %v2120_v0  ;;  %410 = vmatprep.mubr.bf16.mxu0 (!%p266_p9), %v2121_v1  ;;  %2020 = vset.pattern.permute.xlu0 (!%p266_p9), %v2121_v1  ;;  %vm326_vm5 = vmor (!%p266_p9), %vm325_vm4, %vm324_vm3  ;;  %s2123_s23 = smov (!%p266_p9), 127   ;;  %s2124_s24 = smov (!%p266_p9), 126   ;;  %v305_v23 = vld [vmem:[%s2572_s7] sm:$0x3] (!%p266_p9) }
  0x10   : > { %313 = vst.msk [vmem:[#allocation3] sm:$0xff] (!%p266_p9), %vm312_vm2, %v2120_v0  ;;  %2021 = vset.pattern.permute.xlu1 (!%p266_p9), %v2121_v1  ;;  %1145 = vmatprep.mubr.bf16.mxu1 (!%p266_p9), %v2121_v1  ;;  %s2125_s25 = smov (!%p266_p9), 112   ;;  %s2126_s26 = smov (!%p266_p9), 111   ;;  %v332_v24 = vshrl.u32 (!%p266_p9), %v331_v22, 7  ;;  %vm306_vm6 = vcmp.gt.s32.totalorder (!%p266_p9), %v305_v23, 0  ;;  %vm307_vm7 = vcmp.lt.s32.totalorder (!%p266_p9), %v305_v23, 15 }
  0x11   : > { %s2580_s10 = smov (!%p266_p9), 110   ;;  %s2578_s12 = smov (!%p266_p9), 96   ;;  %v330_v27 = vsel (!%p266_p9), %vm306_vm6, 1, %v2121_v1  ;;  %vm364_vm9 = vcmask (!%p266_p9), 1039360   ;;  %v471_v32 = vsel (!%p266_p9), %vm307_vm7, 1, %v2121_v1  ;;  %vm371_vm11 = vcmask (!%p266_p9), 1041408  }
  0x12   : > { %s2576_s13 = smov (!%p266_p9), 95   ;;  %v337_v25 = vsub.s32 (!%p266_p9), 1, %v332_v24  ;;  %v333_v26 = vsub.s32 (!%p266_p9), 0, %v332_v24  ;;  %v1810_v44 = vld [vmem:[%s2566_s1 + $0x4] sm:$0xf] (!%p266_p9)  ;;  %vm367_vm13 = vcmask (!%p266_p9), 31744  }
  0x13   : > { %vm491_vm14 = vcmask (!%p266_p9), 1031168   ;;  %v346_v60 = vld [vmem:[%s2566_s1] sm:$0xf] (!%p266_p9)  ;;  %vm647_vm1 = vcmask (!%p266_p9), 908288   ;;  %vm713_vm3 = vcmask (!%p266_p9), 900096   ;;  %vm787_vm4 = vcmask (!%p266_p9), 785408  }
  0x14   : > { %v2265_v28 = vrot.slane (!%p266_p9), %v330_v27, %v337_v25  ;;  %v2267_v29 = vrot.slane (!%p266_p9), %v330_v27, %v333_v26  ;;  %v2275_v35 = vrot.slane (!%p266_p9), %v471_v32, %v337_v25  ;;  %v2286_v46 = vrot.slane (!%p266_p9), %v471_v32, %v333_v26 }
  0x15   : > { %s300_s17 = scalar_select %p299_p10, %s2198_s9, 1  ;;  %vm935_vm6 = vcmask 769024   ;;  %vm314_vm7 = vcmask 277640  }
  0x16   : > { %vm340_vm8 = vcmp.eq.s32.totalorder %v2265_v28, 1  ;;  %vm339_vm10 = vcmp.eq.s32.totalorder %v2267_v29, 1  ;;  %vm481_vm12 = vcmp.eq.s32.totalorder %v2275_v35, 1  ;;  %vm480_vm15 = vcmp.eq.s32.totalorder %v2286_v46, 1  ;;  %315 = vst.msk [vmem:[#allocation3 + $0x10] sm:$0xff] %vm314_vm7, %v2120_v0 }
  0x17   : > { %s1867_s18 = sshll.u32 %s300_s17, 3  ;;  %s2574_s17 = smov 94  }
  0x18   : > { %s303_s21 = scalar_lea.vmem %s2565_s0, %s1867_s18 }
  0x19   : > { %v316_v2 = vld [vmem:[%s303_s21] sm:$0xff] }
  0x1a   : > { %318 = vrot.lane.b32.xlu0 %v316_v2, %s2122_s22 }
  0x8c   : > { %v319_v3 = vpop.permute.xlu0 %318 }
  0x8d   : > { %v320_v4 = vrot.slane %v319_v3, 4 }
  0x8f   : > { %v321_v5 = vsel %vm312_vm2, %v320_v4, %v319_v3  ;;  %328 = vst.msk [vmem:[#allocation2 + $0x8] sm:$0xf] %vm308_vm0, %v320_v4  ;;  %vm565_vm0 = vcmask 916480  }
  0x90   : > { %327 = vst.msk [vmem:[#allocation2] sm:$0xff] %vm326_vm5, %v321_v5  ;;  %vm869_vm5 = vcmask 777216  }
  0x96   : > { %v349_v10 = vld [vmem:[#allocation2 + $0x8] sm:$0xf] }
  0x97   : > { %v329_v6 = vld [vmem:[#allocation2] sm:$0xff]  ;;  %v354_v12 = vpack.c.bf16 %v349_v10, %v349_v10  ;;  %v470_v13 = vld [vmem:[#allocation2 + $0x8] sm:$0xf] }
  0x98   : > { %v352_v7 = vpack.c.bf16 %v329_v6, %v329_v6  ;;  %v342_v8 = vcombine.high %v329_v6, %v329_v6  ;;  %v629_v14 = vld [vmem:[#allocation2 + $0x8] sm:$0xf]  ;;  %v344_v36 = vsel %vm339_vm10, %v329_v6, 0.0 }
  0x99   : > { %v555_v15 = vld [vmem:[#allocation2 + $0x8] sm:$0xf]  ;;  %v637_v16 = vpack.c.bf16 %v629_v14, %v629_v14  ;;  %v347_v42 = vpack.c.bf16 %v344_v36, %v344_v36 }
  0x9a   : > { %358 = vrot.lane.b32.xlu0 %v352_v7, %s2123_s23  ;;  %v353_v9 = vpack.c.bf16 %v342_v8, %v342_v8  ;;  %v1995_v11 = vpack.i.bf16 %v342_v8, %v329_v6  ;;  %v703_v17 = vld [vmem:[#allocation2 + $0x8] sm:$0xf]  ;;  %v345_v33 = vsel %vm340_vm8, %v342_v8, 0.0 }
  0x9b   : > { %v777_v18 = vld [vmem:[#allocation2 + $0x8] sm:$0xf]  ;;  %v348_v40 = vpack.c.bf16 %v345_v33, %v345_v33  ;;  %v423_v50 = vsel %vm371_vm11, %v347_v42, 0  ;;  %v1824_v42 = vld [vmem:[%s2566_s1 + $0x14] sm:$0xf] }
  0x9c   : > { %360 = vrot.lane.b32.xlu1 %v353_v9, %s2123_s23  ;;  %v851_v19 = vld [vmem:[#allocation2 + $0x8] sm:$0xf] }
  0x9d   : > { %v859_v20 = vpack.c.bf16 %v851_v19, %v851_v19  ;;  %v925_v21 = vld [vmem:[#allocation2 + $0x8] sm:$0xf] }
  0x9e   : > { %1996 = vrot.lane.b32.xlu0 %v1995_v11, %s2124_s24 }
  0xa0   : > { %362 = vrot.lane.b32.xlu1 %v354_v12, %s2123_s23 }
  0xa2   : > { %2001 = vrot.lane.b32.xlu0 %v1995_v11, %s2125_s25 }
  0xa4   : > { %489 = vrot.lane.b32.xlu1 %v470_v13, %s2124_s24 }
  0xa6   : > { %641 = vrot.lane.b32.xlu0 %v352_v7, %s2126_s26 }
  0xa8   : > { %563 = vrot.lane.b32.xlu1 %v555_v15, %s2125_s25 }
  0xaa   : > { %645 = vrot.lane.b32.xlu0 %v637_v16, %s2126_s26 }
  0xac   : > { %643 = vrot.lane.b32.xlu1 %v353_v9, %s2126_s26 }
  0xae   : > { %711 = vrot.lane.b32.xlu0 %v703_v17, %s2580_s10  ;;  %v1818_v17 = vld [vmem:[%s2566_s1 + $0xc] sm:$0xf] }
  0xb0   : > { %2006 = vrot.lane.b32.xlu1 %v1995_v11, %s2580_s10 }
  0xb2   : > { %785 = vrot.lane.b32.xlu0 %v777_v18, %s2578_s12 }
  0xb4   : > { %2011 = vrot.lane.b32.xlu1 %v1995_v11, %s2578_s12 }
  0xb6   : > { %865 = vrot.lane.b32.xlu0 %v353_v9, %s2576_s13 }
  0xb8   : > { %863 = vrot.lane.b32.xlu1 %v352_v7, %s2576_s13  ;;  %v1815_v7 = vld [vmem:[%s2566_s1 + $0x8] sm:$0xf] }
  0xba   : > { %2016 = vrot.lane.b32.xlu0 %v1995_v11, %s2574_s17 }
  0xbc   : > { %867 = vrot.lane.b32.xlu1 %v859_v20, %s2576_s13 }
  0xc0   : > { %933 = vrot.lane.b32.xlu1 %v925_v21, %s2574_s17 }
 0x10c   : > { %v359_v30 = vpop.permute.xlu0 %358 }
 0x10e   : > { %v361_v31 = vpop.permute.xlu1 %360 }
 0x10f   : > { %v365_v34 = vsel %vm364_vm9, %v359_v30, %v361_v31 }
 0x110   : > { %v1997_v37 = vpop.permute.xlu0 %1996  ;;  %v373_v41 = vsel %vm371_vm11, %v365_v34, 0 }
 0x111   : > { %v1999_v43 = vunpack.i.h.bf16 %v1997_v37  ;;  %v1998_v45 = vunpack.i.l.bf16 %v1997_v37 }
 0x112   : > { %v363_v38 = vpop.permute.xlu1 %362 }
 0x113   : > { %v366_v39 = vsel %vm364_vm9, %v361_v31, %v363_v38  ;;  %v492_v53 = vsel %vm491_vm14, %v1998_v45, %v1999_v43  ;;  %v1821_v31 = vld [vmem:[%s2566_s1 + $0x10] sm:$0xf] }
 0x114   : > { %1811 = vmatprep.subr.msk.bf16.mxu0 %vm371_vm11, %v366_v39  ;;  %v2002_v51 = vpop.permute.xlu0 %2001  ;;  %v496_v56 = vsel %vm480_vm15, %v492_v53, 0.0 }
 0x115   : > { %379 = vmatpush1.bf16.msra.mxu0 %v373_v41  ;;  %v2004_v55 = vunpack.i.h.bf16 %v2002_v51  ;;  %v500_v58 = vpack.c.bf16 %v496_v56, %v496_v56  ;;  %v2003_v61 = vunpack.i.l.bf16 %v2002_v51 }
 0x116   : > { %v490_v47 = vpop.permute.xlu1 %489  ;;  %1813 = vmatprep.subr.msk.bf16.mxu0 %vm371_vm11, %v348_v40 }
 0x117   : > { %v493_v48 = vsel %vm491_vm14, %v1999_v43, %v490_v47  ;;  %v506_v63 = vsel %vm371_vm11, %v500_v58, 0  ;;  %v566_v2 = vsel %vm565_vm0, %v2003_v61, %v2004_v55  ;;  %v1833_v61 = vld [vmem:[%s2566_s1 + $0x20] sm:$0xf] }
 0x118   : > { %v497_v49 = vsel %vm481_vm12, %v493_v48, 0.0  ;;  %1812 = vmatmul.mubr.msk.bf16.vlgmr.msra.gmra.mrb[0].mxu0 %vm367_vm13, %v1810_v44  ;;  %v642_v3 = vpop.permute.xlu0 %641  ;;  %v570_v5 = vsel %vm339_vm10, %v566_v2, 0.0 }
 0x119   : > { %v501_v52 = vpack.c.bf16 %v497_v49, %v497_v49  ;;  %429 = vmatpush1.bf16.msra.mxu0 %v423_v50  ;;  %460 = vmatprep.mubr.bf16.mxu0 %v2121_v1  ;;  %v574_v6 = vpack.c.bf16 %v570_v5, %v570_v5 }
 0x11a   : > { %v564_v54 = vpop.permute.xlu1 %563 }
 0x11b   : > { %1816 = vmatprep.subr.msk.bf16.mxu0 %vm371_vm11, %v501_v52  ;;  %v567_v57 = vsel %vm565_vm0, %v2004_v55, %v564_v54  ;;  %v580_v10 = vsel %vm371_vm11, %v574_v6, 0  ;;  %v1827_v52 = vld [vmem:[%s2566_s1 + $0x18] sm:$0xf] }
 0x11c   : > { %v571_v59 = vsel %vm340_vm8, %v567_v57, 0.0  ;;  %v646_v8 = vpop.permute.xlu0 %645 }
 0x11d   : > { %v575_v62 = vpack.c.bf16 %v571_v59, %v571_v59  ;;  %v1830_v59 = vld [vmem:[%s2566_s1 + $0x1c] sm:$0xf] }
 0x11e   : > { %v644_v4 = vpop.permute.xlu1 %643 }
 0x11f   : > { %v649_v11 = vsel %vm647_vm1, %v644_v4, %v646_v8  ;;  %v648_v15 = vsel %vm647_vm1, %v642_v3, %v644_v4  ;;  %v1038_v8 = vld [vmem:[%s2567_s2] sm:$0xff] }
 0x120   : > { %v712_v13 = vpop.permute.xlu0 %711  ;;  %v654_v20 = vsel %vm371_vm11, %v648_v15, 0 }
 0x122   : > { %v2007_v9 = vpop.permute.xlu1 %2006 }
 0x123   : > { %v2009_v12 = vunpack.i.h.bf16 %v2007_v9  ;;  %v2008_v18 = vunpack.i.l.bf16 %v2007_v9  ;;  %v1046_v9 = vld [vmem:[%s2568_s3] sm:$0xff] }
 0x124   : > { %1814 = vmatmul.mubr.msk.bf16.vlgmr.msra.gmra.mrb[0].mxu0 %vm367_vm13, %v346_v60  ;;  %v786_v24 = vpop.permute.xlu0 %785 }
 0x125   : > { %512 = vmatpush1.bf16.msra.mxu0 %v506_v63  ;;  %543 = vmatprep.mubr.bf16.mxu0 %v2121_v1  ;;  %v715_v14 = vsel %vm713_vm3, %v2009_v12, %v712_v13  ;;  %v714_v22 = vsel %vm713_vm3, %v2008_v18, %v2009_v12 }
 0x126   : > { %1819 = vmatprep.subr.msk.bf16.mxu0 %vm371_vm11, %v575_v62  ;;  %v719_v16 = vsel %vm481_vm12, %v715_v14, 0.0  ;;  %v2012_v19 = vpop.permute.xlu1 %2011  ;;  %v718_v25 = vsel %vm480_vm15, %v714_v22, 0.0 }
 0x127   : > { %v723_v21 = vpack.c.bf16 %v719_v16, %v719_v16  ;;  %v2014_v23 = vunpack.i.h.bf16 %v2012_v19  ;;  %v722_v27 = vpack.c.bf16 %v718_v25, %v718_v25  ;;  %v2013_v32 = vunpack.i.l.bf16 %v2012_v19 }
 0x128   : > { %v866_v39 = vpop.permute.xlu0 %865 }
 0x129   : > { %v789_v26 = vsel %vm787_vm4, %v2014_v23, %v786_v24  ;;  %v728_v33 = vsel %vm371_vm11, %v722_v27, 0  ;;  %v788_v36 = vsel %vm787_vm4, %v2013_v32, %v2014_v23 }
 0x12a   : > { %v793_v30 = vsel %vm340_vm8, %v789_v26, 0.0  ;;  %v864_v37 = vpop.permute.xlu1 %863  ;;  %v792_v38 = vsel %vm339_vm10, %v788_v36, 0.0 }
 0x12b   : > { %v797_v34 = vpack.c.bf16 %v793_v30, %v793_v30  ;;  %v796_v40 = vpack.c.bf16 %v792_v38, %v792_v38  ;;  %v870_v50 = vsel %vm869_vm5, %v864_v37, %v866_v39 }
 0x12c   : > { %v2017_v44 = vpop.permute.xlu0 %2016  ;;  %v876_v54 = vsel %vm371_vm11, %v870_v50, 0 }
 0x12d   : > { %v802_v43 = vsel %vm371_vm11, %v796_v40, 0  ;;  %v2019_v48 = vunpack.i.h.bf16 %v2017_v44  ;;  %v2018_v53 = vunpack.i.l.bf16 %v2017_v44 }
 0x12e   : > { %v868_v41 = vpop.permute.xlu1 %867 }
 0x12f   : > { %v871_v45 = vsel %vm869_vm5, %v866_v39, %v868_v41  ;;  %v936_v56 = vsel %vm935_vm6, %v2018_v53, %v2019_v48 }
 0x130   : > { %1817 = vmatmul.mubr.msk.bf16.vlgmr.msra.gmra.mrb[0].mxu0 %vm367_vm13, %v1815_v7  ;;  %v940_v57 = vsel %vm480_vm15, %v936_v56, 0.0 }
 0x131   : > { %586 = vmatpush1.bf16.msra.mxu0 %v580_v10  ;;  %617 = vmatprep.mubr.bf16.mxu0 %v2121_v1  ;;  %v944_v58 = vpack.c.bf16 %v940_v57, %v940_v57 }
 0x132   : > { %1822 = vmatprep.subr.msk.bf16.mxu0 %vm371_vm11, %v649_v11  ;;  %v934_v47 = vpop.permute.xlu1 %933 }
 0x133   : > { %v937_v49 = vsel %vm935_vm6, %v2019_v48, %v934_v47  ;;  %v950_v60 = vsel %vm371_vm11, %v944_v58, 0 }
 0x134   : > { %v941_v51 = vsel %vm481_vm12, %v937_v49, 0.0 }
 0x135   : > { %v945_v55 = vpack.c.bf16 %v941_v51, %v941_v51 }
 0x13c   : > { %1820 = vmatmul.mubr.msk.bf16.vlgmr.msra.gmra.mrb[0].mxu0 %vm367_vm13, %v1818_v17 }
 0x13d   : > { %660 = vmatpush1.bf16.msra.mxu0 %v654_v20  ;;  %691 = vmatprep.mubr.bf16.mxu0 %v2121_v1 }
 0x13e   : > { %1825 = vmatprep.subr.msk.bf16.mxu0 %vm371_vm11, %v723_v21 }
 0x148   : > { %1823 = vmatmul.mubr.msk.bf16.vlgmr.msra.gmra.mrb[0].mxu0 %vm367_vm13, %v1821_v31 }
 0x149   : > { %734 = vmatpush1.bf16.msra.mxu0 %v728_v33  ;;  %765 = vmatprep.mubr.bf16.mxu0 %v2121_v1 }
 0x14a   : > { %1828 = vmatprep.subr.msk.bf16.mxu0 %vm371_vm11, %v797_v34 }
 0x154   : > { %1826 = vmatmul.mubr.msk.bf16.vlgmr.msra.gmra.mrb[0].mxu0 %vm367_vm13, %v1824_v42 }
 0x155   : > { %808 = vmatpush1.bf16.msra.mxu0 %v802_v43  ;;  %839 = vmatprep.mubr.bf16.mxu0 %v2121_v1 }
 0x156   : > { %1831 = vmatprep.subr.msk.bf16.mxu0 %vm371_vm11, %v871_v45 }
 0x160   : > { %1829 = vmatmul.mubr.msk.bf16.vlgmr.msra.gmra.mrb[0].mxu0 %vm367_vm13, %v1827_v52 }
 0x161   : > { %882 = vmatpush1.bf16.msra.mxu0 %v876_v54  ;;  %913 = vmatprep.mubr.bf16.mxu0 %v2121_v1 }
 0x162   : > { %1834 = vmatprep.subr.msk.bf16.mxu0 %vm371_vm11, %v945_v55  ;;  %vm1074_vm11 = vcmask 1047688  }
 0x16c   : > { %1832 = vmatmul.mubr.msk.bf16.vlgmr.msra.gmra.mrb[0].mxu0 %vm367_vm13, %v1830_v59 }
 0x16d   : > { %956 = vmatpush1.bf16.msra.mxu0 %v950_v60  ;;  %987 = vmatprep.mubr.bf16.mxu0 %v2121_v1 }
 0x178   : > { %1835 = vmatmul.mubr.msk.bf16.vlgmr.msra.gmra.mrb[0].mxu0 %vm367_vm13, %v1833_v61  ;;  %vm1102_vm13 = vcmask 64512  }
 0x24b   : > { %v989_v62 = vpop.f32.mrb[0].mxu0 }
 0x24c   : > { %v991_v63 = vpop.f32.mrb[1].mxu0  ;;  %v1008_v2 = vmul.f32 %v989_v62, %v989_v62 }
 0x24d   : > { %v993_v3 = vpop.f32.mrb[2].mxu0  ;;  %v998_v4 = vadd.f32 %v991_v63, %v989_v62  ;;  %v1009_v5 = vmul.f32 %v991_v63, %v991_v63 }
 0x24e   : > { %v994_v6 = vpop.f32.mrb[3].mxu0 }
 0x24f   : > { %999 = vadd.xlane.f32.xlu0 %v998_v4  ;;  %v1010_v7 = vadd.f32 %v1009_v5, %v1008_v2 }
 0x251   : > { %1011 = vadd.xlane.f32.xlu1 %v1010_v7 }
 0x262   : > { %1049 = vperm.xlu1 %2021, %v1046_v9  }
 0x265   : > { %1041 = vperm.xlu0 %2020, %v1038_v8   ;;  %v1836_v8 = vld [vmem:[%s2569_s4 + $0x4] sm:$0xf] }
 0x2dc   : > { %v1000_v10 = vpop.xlane.xlu0 %999 }
 0x2dd   : > { %v1001_v11 = vrot.slane %v1000_v10, 4 }
 0x2de   : > { %v1012_v12 = vpop.xlane.xlu1 %1011 }
 0x2df   : > { %v1002_v13 = vadd.f32 %v1001_v11, %v1000_v10  ;;  %v1013_v14 = vrot.slane %v1012_v12, 4 }
 0x2e1   : > { %v1003_v15 = vrot.slane %v1002_v13, 2  ;;  %v1014_v16 = vadd.f32 %v1013_v14, %v1012_v12 }
 0x2e2   : > { %v1050_v36 = vpop.permute.xlu1 %1049 }
 0x2e3   : > { %v1015_v17 = vrot.slane %v1014_v16, 2  ;;  %v1004_v18 = vadd.f32 %v1003_v15, %v1002_v13 }
 0x2e4   : > { %v1042_v32 = vpop.permute.xlu0 %1041 }
 0x2e5   : > { %v1005_v19 = vrot.slane %v1004_v18, 1  ;;  %v1016_v20 = vadd.f32 %v1015_v17, %v1014_v16 }
 0x2e7   : > { %v1006_v21 = vadd.f32 %v1005_v19, %v1004_v18  ;;  %v1017_v22 = vrot.slane %v1016_v20, 1 }
 0x2e9   : > { %1933 = vpush %v1006_v21  ;;  %v1018_v23 = vadd.f32 %v1017_v22, %v1016_v20 }
 0x2eb   : > { %1935 = vpush %v1018_v23 }
 0x31a   : > { %s1934_s13 = spop %1933 }
 0x31b   : > { %s1022_s17 = smul.f32 0.00048828125, %s1934_s13  ;;  %s296_s13 = sand.u32 1, %s2110_s28  }
 0x31c   : > { %s1936_s20 = spop %1935 }
 0x31d   : > { %s1026_s21 = smul.f32 %s1022_s17, %s1022_s17  ;;  %v1028_v24 = vstv %s1022_s17  ;;  %s1807_s17 = sshll.u32 %s296_s13, 4 }
 0x31e   : > { %s1025_s18 = smul.f32 0.00048828125, %s1936_s20  ;;  %v1029_v25 = vsub.f32 %v989_v62, %v1028_v24  ;;  %v1030_v26 = vsub.f32 %v991_v63, %v1028_v24 }
 0x320   : > { %s1027_s19 = ssub.f32 %s1025_s18, %s1026_s21  ;;  %s1868_s21 = sshll.u32 %s2198_s9, 8 }
 0x321   : > { %s298_s18 = scalar_lea.vmem [#allocation4], %s1807_s17  ;;  %s1730_s9 = scalar_lea.sflag [#allocation5], %s296_s13 }
 0x322   : > { %s1031_s12 = sadd.f32 1e-05, %s1027_s19  ;;  %s1744_s19 = sshll.u32 %s298_s18, 4  ;;  %s2525_s19 = int_to_ptr.vmem [resolvable:$true] %s1744_s19 }
 0x324   : > { %v1032_v27 = vstv %s1031_s12  ;;  %s2586_s12 = smov 95  }
 0x325   : > { %2048 = vrsqrt.f32 %v1032_v27 }
 0x32f   : > { %v2049_v30 = vpop.eup %2048 }
 0x330   : > { %1937 = vpush %v2049_v30 }
 0x361   : > { %s1938_s10 = spop %1937 }
 0x362   : > { %v1035_v31 = vstv %s1938_s10  ;;  %s2585_s10 = smov 96  }
 0x363   : > { %v1036_v33 = vmul.f32 %v1035_v31, %v1029_v25  ;;  %v1037_v34 = vmul.f32 %v1035_v31, %v1030_v26  ;;  %v1082_v25 = vld [vmem:[%s2569_s4] sm:$0xf] }
 0x365   : > { %v1044_v37 = vmul.f32 %v1042_v32, %v1036_v33  ;;  %v1045_v38 = vmul.f32 %v1042_v32, %v1037_v34 }
 0x367   : > { %v1052_v39 = vadd.f32 %v1050_v36, %v1044_v37  ;;  %v1053_v40 = vadd.f32 %v1050_v36, %v1045_v38  ;;  %v1841_v38 = vld [vmem:[%s2569_s4 + $0x8] sm:$0xf] }
 0x369   : > { %v1056_v41 = vmul.f32 0.70710677, %v1052_v39  ;;  %v1057_v42 = vmul.f32 0.70710677, %v1053_v40  ;;  %v1054_v45 = vmul.f32 0.5, %v1052_v39  ;;  %v1055_v50 = vmul.f32 0.5, %v1053_v40 }
 0x36b   : > { %2050 = verf.f32 %v1056_v41 }
 0x36c   : > { %2052 = verf.f32 %v1057_v42 }
 0x375   : > { %v2051_v43 = vpop.eup %2050 }
 0x376   : > { %v2053_v44 = vpop.eup %2052  ;;  %v1060_v47 = vadd.f32 1.0, %v2051_v43 }
 0x377   : > { %v1061_v49 = vadd.f32 1.0, %v2053_v44 }
 0x378   : > { %v1062_v48 = vmul.f32 %v1060_v47, %v1054_v45 }
 0x379   : > { %v1063_v51 = vmul.f32 %v1061_v49, %v1055_v50 }
 0x37a   : > { %1066 = vrot.lane.b32.xlu1 %v1062_v48, %s2122_s22  ;;  %v1844_v48 = vld [vmem:[%s2569_s4 + $0xc] sm:$0xf] }
 0x37e   : > { %1068 = vrot.lane.b32.xlu1 %v1063_v51, %s2122_s22  ;;  %s2584_s22 = smov 110  }
 0x3ec   : > { %v1067_v52 = vpop.permute.xlu1 %1066 }
 0x3ed   : > { %1075 = vst.msk [vmem:[#allocation3] sm:$0xff] %vm1074_vm11, %v1067_v52 }
 0x3f0   : > { %v1069_v53 = vpop.permute.xlu1 %1068 }
 0x3f1   : > { %v1070_v54 = vsel %vm312_vm2, %v1067_v52, %v1069_v53  ;;  %1077 = vst.msk [vmem:[#allocation3 + $0x10] sm:$0xff] %vm312_vm2, %v1069_v53  ;;  %vm1106_vm2 = vcmask 1043456  }
 0x3f2   : > { %v1089_v57 = vpack.c.bf16 %v1070_v54, %v1070_v54  ;;  %v1081_v63 = vsel %vm340_vm8, %v1070_v54, 0.0 }
 0x3f3   : > { %v1084_v6 = vpack.c.bf16 %v1081_v63, %v1081_v63 }
 0x3f4   : > { %v1078_v0 = vld [vmem:[#allocation3] sm:$0xff] }
 0x3f5   : > { %v1088_v55 = vpack.c.bf16 %v1078_v0, %v1078_v0  ;;  %v2022_v59 = vpack.i.bf16 %v1070_v54, %v1078_v0  ;;  %v1080_v2 = vsel %vm339_vm10, %v1078_v0, 0.0 }
 0x3f6   : > { %v1083_v7 = vpack.c.bf16 %v1080_v2, %v1080_v2 }
 0x3f7   : > { %1094 = vrot.lane.b32.xlu1 %v1088_v55, %s2123_s23 }
 0x3f8   : > { %v1085_v56 = vld [vmem:[#allocation3 + $0x10] sm:$0xff]  ;;  %v1158_v13 = vsel %vm1106_vm2, %v1083_v7, 0 }
 0x3f9   : > { %1211 = vrot.lane.b32.xlu0 %v1085_v56, %s2124_s24  ;;  %v1090_v58 = vpack.c.bf16 %v1085_v56, %v1085_v56 }
 0x3fb   : > { %1096 = vrot.lane.b32.xlu1 %v1089_v57, %s2123_s23 }
 0x3fd   : > { %1279 = vrot.lane.b32.xlu0 %v1085_v56, %s2125_s25 }
 0x3ff   : > { %1098 = vrot.lane.b32.xlu1 %v1090_v58, %s2123_s23  ;;  %s2587_s23 = smov 94  }
 0x401   : > { %1347 = vrot.lane.b32.xlu0 %v1089_v57, %s2126_s26 }
 0x403   : > { %2023 = vrot.lane.b32.xlu1 %v2022_v59, %s2124_s24 }
 0x405   : > { %2033 = vrot.lane.b32.xlu0 %v2022_v59, %s2584_s22 }
 0x407   : > { %2028 = vrot.lane.b32.xlu1 %v2022_v59, %s2125_s25 }
 0x409   : > { %2038 = vrot.lane.b32.xlu0 %v2022_v59, %s2585_s10 }
 0x40b   : > { %1345 = vrot.lane.b32.xlu1 %v1088_v55, %s2126_s26 }
 0x40d   : > { %1543 = vrot.lane.b32.xlu0 %v1088_v55, %s2586_s12 }
 0x40f   : > { %1349 = vrot.lane.b32.xlu1 %v1090_v58, %s2126_s26 }
 0x411   : > { %1547 = vrot.lane.b32.xlu0 %v1090_v58, %s2586_s12 }
 0x413   : > { %1409 = vrot.lane.b32.xlu1 %v1085_v56, %s2584_s22 }
 0x415   : > { %1607 = vrot.lane.b32.xlu0 %v1085_v56, %s2587_s23 }
 0x417   : > { %1477 = vrot.lane.b32.xlu1 %v1085_v56, %s2585_s10 }
 0x41b   : > { %1545 = vrot.lane.b32.xlu1 %v1089_v57, %s2586_s12 }
 0x41f   : > { %2043 = vrot.lane.b32.xlu1 %v2022_v59, %s2587_s23  ;;  %v1847_v59 = vld [vmem:[%s2569_s4 + $0x10] sm:$0xf] }
 0x469   : > { %v1095_v60 = vpop.permute.xlu1 %1094 }
 0x46b   : > { %v1212_v10 = vpop.permute.xlu0 %1211 }
 0x46d   : > { %v1097_v61 = vpop.permute.xlu1 %1096 }
 0x46e   : > { %v1100_v62 = vsel %vm364_vm9, %v1095_v60, %v1097_v61 }
 0x46f   : > { %v1108_v5 = vsel %vm1106_vm2, %v1100_v62, 0  ;;  %v1280_v20 = vpop.permute.xlu0 %1279 }
 0x471   : > { %v1099_v3 = vpop.permute.xlu1 %1098 }
 0x472   : > { %v1101_v4 = vsel %vm364_vm9, %v1097_v61, %v1099_v3 }
 0x473   : > { %1837 = vmatprep.subr.msk.bf16.mxu1 %vm1106_vm2, %v1101_v4  ;;  %v1348_v34 = vpop.permute.xlu0 %1347 }
 0x474   : > { %1114 = vmatpush1.bf16.msra.mxu1 %v1108_v5  ;;  %v1850_v5 = vld [vmem:[%s2569_s4 + $0x14] sm:$0xf] }
 0x475   : > { %1839 = vmatprep.subr.msk.bf16.mxu1 %vm1106_vm2, %v1084_v6  ;;  %v2024_v9 = vpop.permute.xlu1 %2023 }
 0x476   : > { %v2026_v11 = vunpack.i.h.bf16 %v2024_v9  ;;  %v2025_v12 = vunpack.i.l.bf16 %v2024_v9 }
 0x477   : > { %1838 = vmatmul.mubr.msk.bf16.vlgmr.msra.gmra.mrb[0].mxu1 %vm1102_vm13, %v1836_v8  ;;  %v2034_v40 = vpop.permute.xlu0 %2033 }
 0x478   : > { %v1214_v14 = vsel %vm491_vm14, %v2026_v11, %v1212_v10  ;;  %1164 = vmatpush1.bf16.msra.mxu1 %v1158_v13  ;;  %1195 = vmatprep.mubr.bf16.mxu1 %v2121_v1  ;;  %v1213_v16 = vsel %vm491_vm14, %v2025_v12, %v2026_v11  ;;  %v2036_v43 = vunpack.i.h.bf16 %v2034_v40  ;;  %v2035_v49 = vunpack.i.l.bf16 %v2034_v40 }
 0x479   : > { %v1218_v15 = vsel %vm481_vm12, %v1214_v14, 0.0  ;;  %v2029_v17 = vpop.permute.xlu1 %2028  ;;  %v1217_v21 = vsel %vm480_vm15, %v1213_v16, 0.0  ;;  %v1853_v14 = vld [vmem:[%s2569_s4 + $0x18] sm:$0xf] }
 0x47a   : > { %v2031_v18 = vunpack.i.h.bf16 %v2029_v17  ;;  %v1222_v19 = vpack.c.bf16 %v1218_v15, %v1218_v15  ;;  %v1221_v23 = vpack.c.bf16 %v1217_v21, %v1217_v21  ;;  %v2030_v26 = vunpack.i.l.bf16 %v2029_v17 }
 0x47b   : > { %v2039_v52 = vpop.permute.xlu0 %2038  ;;  %v1411_v53 = vsel %vm713_vm3, %v2035_v49, %v2036_v43 }
 0x47c   : > { %1842 = vmatprep.subr.msk.bf16.mxu1 %vm1106_vm2, %v1222_v19  ;;  %v1282_v22 = vsel %vm565_vm0, %v2031_v18, %v1280_v20  ;;  %v1227_v27 = vsel %vm1106_vm2, %v1221_v23, 0  ;;  %v1281_v31 = vsel %vm565_vm0, %v2030_v26, %v2031_v18  ;;  %v2041_v0 = vunpack.i.h.bf16 %v2039_v52  ;;  %v1856_v20 = vld [vmem:[%s2569_s4 + $0x1c] sm:$0xf] }
 0x47d   : > { %v1286_v24 = vsel %vm340_vm8, %v1282_v22, 0.0  ;;  %v1346_v32 = vpop.permute.xlu1 %1345  ;;  %v1285_v33 = vsel %vm339_vm10, %v1281_v31, 0.0  ;;  %v1415_v55 = vsel %vm480_vm15, %v1411_v53, 0.0  ;;  %v2040_v60 = vunpack.i.l.bf16 %v2039_v52  ;;  %v1859_v22 = vld [vmem:[%s2569_s4 + $0x20] sm:$0xf] }
 0x47e   : > { %v1290_v30 = vpack.c.bf16 %v1286_v24, %v1286_v24  ;;  %v1289_v36 = vpack.c.bf16 %v1285_v33, %v1285_v33  ;;  %v1351_v45 = vsel %vm647_vm1, %v1346_v32, %v1348_v34  ;;  %v1419_v57 = vpack.c.bf16 %v1415_v55, %v1415_v55  ;;  %v1711_v32 = vld [vmem:[%s2570_s5] sm:$0xff] }
 0x47f   : > { %v1357_v50 = vsel %vm1106_vm2, %v1351_v45, 0  ;;  %v1479_v63 = vsel %vm787_vm4, %v2040_v60, %v2041_v0  ;;  %v1544_v2 = vpop.permute.xlu0 %1543 }
 0x480   : > { %v1295_v39 = vsel %vm1106_vm2, %v1289_v36, 0  ;;  %v1425_v62 = vsel %vm1106_vm2, %v1419_v57, 0  ;;  %v1483_v3 = vsel %vm339_vm10, %v1479_v63, 0.0 }
 0x481   : > { %v1350_v37 = vpop.permute.xlu1 %1349  ;;  %v1487_v4 = vpack.c.bf16 %v1483_v3, %v1483_v3 }
 0x482   : > { %v1352_v41 = vsel %vm647_vm1, %v1348_v34, %v1350_v37 }
 0x483   : > { %1840 = vmatmul.mubr.msk.bf16.vlgmr.msra.gmra.mrb[0].mxu1 %vm1102_vm13, %v1082_v25  ;;  %v1548_v6 = vpop.permute.xlu0 %1547  ;;  %v1493_v8 = vsel %vm1106_vm2, %v1487_v4, 0 }
 0x484   : > { %1233 = vmatpush1.bf16.msra.mxu1 %v1227_v27  ;;  %1264 = vmatprep.mubr.bf16.mxu1 %v2121_v1 }
 0x485   : > { %1845 = vmatprep.subr.msk.bf16.mxu1 %vm1106_vm2, %v1290_v30  ;;  %v1410_v42 = vpop.permute.xlu1 %1409 }
 0x486   : > { %v1412_v44 = vsel %vm713_vm3, %v2036_v43, %v1410_v42 }
 0x487   : > { %v1416_v47 = vsel %vm481_vm12, %v1412_v44, 0.0  ;;  %v1608_v29 = vpop.permute.xlu0 %1607 }
 0x488   : > { %v1420_v51 = vpack.c.bf16 %v1416_v47, %v1416_v47 }
 0x489   : > { %v1478_v54 = vpop.permute.xlu1 %1477 }
 0x48a   : > { %v1480_v56 = vsel %vm787_vm4, %v2041_v0, %v1478_v54 }
 0x48b   : > { %v1484_v58 = vsel %vm340_vm8, %v1480_v56, 0.0 }
 0x48c   : > { %v1488_v61 = vpack.c.bf16 %v1484_v58, %v1484_v58 }
 0x48d   : > { %v1546_v28 = vpop.permute.xlu1 %1545 }
 0x48e   : > { %v1550_v9 = vsel %vm869_vm5, %v1546_v28, %v1548_v6  ;;  %v1549_v12 = vsel %vm869_vm5, %v1544_v2, %v1546_v28 }
 0x48f   : > { %1843 = vmatmul.mubr.msk.bf16.vlgmr.msra.gmra.mrb[0].mxu1 %vm1102_vm13, %v1841_v38  ;;  %v1555_v16 = vsel %vm1106_vm2, %v1549_v12, 0 }
 0x490   : > { %1301 = vmatpush1.bf16.msra.mxu1 %v1295_v39  ;;  %1332 = vmatprep.mubr.bf16.mxu1 %v2121_v1 }
 0x491   : > { %1848 = vmatprep.subr.msk.bf16.mxu1 %vm1106_vm2, %v1352_v41  ;;  %v2044_v7 = vpop.permute.xlu1 %2043 }
 0x492   : > { %v2046_v10 = vunpack.i.h.bf16 %v2044_v7  ;;  %v2045_v15 = vunpack.i.l.bf16 %v2044_v7 }
 0x494   : > { %v1610_v11 = vsel %vm935_vm6, %v2046_v10, %v1608_v29  ;;  %v1609_v18 = vsel %vm935_vm6, %v2045_v15, %v2046_v10 }
 0x495   : > { %v1614_v13 = vsel %vm481_vm12, %v1610_v11, 0.0  ;;  %v1613_v35 = vsel %vm480_vm15, %v1609_v18, 0.0 }
 0x496   : > { %v1618_v17 = vpack.c.bf16 %v1614_v13, %v1614_v13  ;;  %v1617_v19 = vpack.c.bf16 %v1613_v35, %v1613_v35 }
 0x498   : > { %v1623_v21 = vsel %vm1106_vm2, %v1617_v19, 0 }
 0x49b   : > { %1846 = vmatmul.mubr.msk.bf16.vlgmr.msra.gmra.mrb[0].mxu1 %vm1102_vm13, %v1844_v48 }
 0x49c   : > { %1363 = vmatpush1.bf16.msra.mxu1 %v1357_v50  ;;  %1394 = vmatprep.mubr.bf16.mxu1 %v2121_v1 }
 0x49d   : > { %1851 = vmatprep.subr.msk.bf16.mxu1 %vm1106_vm2, %v1420_v51 }
 0x4a7   : > { %1849 = vmatmul.mubr.msk.bf16.vlgmr.msra.gmra.mrb[0].mxu1 %vm1102_vm13, %v1847_v59 }
 0x4a8   : > { %1431 = vmatpush1.bf16.msra.mxu1 %v1425_v62  ;;  %1462 = vmatprep.mubr.bf16.mxu1 %v2121_v1 }
 0x4a9   : > { %1854 = vmatprep.subr.msk.bf16.mxu1 %vm1106_vm2, %v1488_v61 }
 0x4b3   : > { %1852 = vmatmul.mubr.msk.bf16.vlgmr.msra.gmra.mrb[0].mxu1 %vm1102_vm13, %v1850_v5 }
 0x4b4   : > { %1499 = vmatpush1.bf16.msra.mxu1 %v1493_v8  ;;  %1530 = vmatprep.mubr.bf16.mxu1 %v2121_v1 }
 0x4b5   : > { %1857 = vmatprep.subr.msk.bf16.mxu1 %vm1106_vm2, %v1550_v9 }
 0x4bf   : > { %1855 = vmatmul.mubr.msk.bf16.vlgmr.msra.gmra.mrb[0].mxu1 %vm1102_vm13, %v1853_v14 }
 0x4c0   : > { %1561 = vmatpush1.bf16.msra.mxu1 %v1555_v16  ;;  %1592 = vmatprep.mubr.bf16.mxu1 %v2121_v1 }
 0x4c1   : > { %1860 = vmatprep.subr.msk.bf16.mxu1 %vm1106_vm2, %v1618_v17 }
 0x4cb   : > { %1858 = vmatmul.mubr.msk.bf16.vlgmr.msra.gmra.mrb[0].mxu1 %vm1102_vm13, %v1856_v20 }
 0x4cc   : > { %1629 = vmatpush1.bf16.msra.mxu1 %v1623_v21  ;;  %1660 = vmatprep.mubr.bf16.mxu1 %v2121_v1  ;;  %v1719_v1 = vld [vmem:[%s2571_s6] sm:$0xff] }
 0x4d7   : > { %1861 = vmatmul.mubr.msk.bf16.vlgmr.msra.gmra.mrb[0].mxu1 %vm1102_vm13, %v1859_v22 }
 0x5aa   : > { %v1662_v46 = vpop.f32.mrb[0].mxu1 }
 0x5ab   : > { %v1664_v23 = vpop.f32.mrb[1].mxu1  ;;  %v1681_v24 = vmul.f32 %v1662_v46, %v1662_v46 }
 0x5ac   : > { %v1666_v25 = vpop.f32.mrb[2].mxu1  ;;  %v1671_v26 = vadd.f32 %v1664_v23, %v1662_v46  ;;  %v1682_v27 = vmul.f32 %v1664_v23, %v1664_v23 }
 0x5ad   : > { %v1667_v30 = vpop.f32.mrb[3].mxu1 }
 0x5ae   : > { %1672 = vadd.xlane.f32.xlu1 %v1671_v26  ;;  %v1683_v31 = vadd.f32 %v1682_v27, %v1681_v24 }
 0x5b0   : > { %1684 = vadd.xlane.f32.xlu0 %v1683_v31 }
 0x5bf   : > { %1722 = vperm.xlu1 %2021, %v1719_v1  }
 0x5c6   : > { %1714 = vperm.xlu0 %2020, %v1711_v32  }
 0x63b   : > { %v1673_v33 = vpop.xlane.xlu1 %1672 }
 0x63c   : > { %v1674_v34 = vrot.slane %v1673_v33, 4 }
 0x63d   : > { %v1685_v36 = vpop.xlane.xlu0 %1684 }
 0x63e   : > { %v1675_v37 = vadd.f32 %v1674_v34, %v1673_v33  ;;  %v1686_v38 = vrot.slane %v1685_v36, 4 }
 0x63f   : > { %v1723_v59 = vpop.permute.xlu1 %1722 }
 0x640   : > { %v1676_v39 = vrot.slane %v1675_v37, 2  ;;  %v1687_v40 = vadd.f32 %v1686_v38, %v1685_v36 }
 0x642   : > { %v1688_v41 = vrot.slane %v1687_v40, 2  ;;  %v1677_v42 = vadd.f32 %v1676_v39, %v1675_v37 }
 0x644   : > { %v1678_v43 = vrot.slane %v1677_v42, 1  ;;  %v1689_v44 = vadd.f32 %v1688_v41, %v1687_v40 }
 0x645   : > { %v1715_v56 = vpop.permute.xlu0 %1714 }
 0x646   : > { %v1679_v45 = vadd.f32 %v1678_v43, %v1677_v42  ;;  %v1690_v47 = vrot.slane %v1689_v44, 1 }
 0x648   : > { %1939 = vpush %v1679_v45  ;;  %v1691_v48 = vadd.f32 %v1690_v47, %v1689_v44 }
 0x64a   : > { %1941 = vpush %v1691_v48 }
 0x679   : > { %s1940_s22 = spop %1939 }
 0x67a   : > { %s1695_s10 = smul.f32 0.00048828125, %s1940_s22 }
 0x67b   : > { %s1942_s12 = spop %1941 }
 0x67c   : > { %s1699_s23 = smul.f32 %s1695_s10, %s1695_s10  ;;  %v1701_v49 = vstv %s1695_s10 }
 0x67d   : > { %s1698_s24 = smul.f32 0.00048828125, %s1942_s12  ;;  %v1702_v50 = vsub.f32 %v1662_v46, %v1701_v49  ;;  %v1703_v51 = vsub.f32 %v1664_v23, %v1701_v49  ;;  %s2523_s12 = scalar_lea.hbm %s2573_s8, %s1868_s21 }
 0x67f   : > { %s1700_s25 = ssub.f32 %s1698_s24, %s1699_s23  ;;  %s2056_s23 = scalar_lea.vmem %s2525_s19, 256 }
 0x680   : > { %p2057_p11 = scmp.ne.s32.totalorder %s2525_s19, %s2056_s23  ;;  %s2131_s24 = smov [#allocation4]  }
 0x681   : > { %s1704_s26 = sadd.f32 1e-05, %s1700_s25  ;;  %s2060_s25 = sshll.u32 %s2131_s24, 4  ;;  %s2061_s25 = int_to_ptr.vmem [resolvable:$false] %s2060_s25 }
 0x682   : > { %p2058_p12 = pnand %p2057_p11, %p2215_p5  ;;  %p2063_p0 = scmp.lt.s32.totalorder %s2525_s19, %s2061_s25 }
 0x683   : > { %v1705_v52 = vstv %s1704_s26  ;;  %s2062_s26 = scalar_lea.vmem %s2061_s25, 512 }
 0x684   : > { %2054 = vrsqrt.f32 %v1705_v52  ;;  %p2059_p13 = pneg %p2058_p12  ;;  %p2064_p1 = scmp.lt.s32.totalorder %s2062_s26, %s2056_s23 }
 0x686   : > { %p2065_p2 = por %p2064_p1, %p2063_p0 }
 0x688   : > { %p2066_p3 = pnand %p2065_p2, %p2059_p13 }
 0x68e   : > { %v2055_v53 = vpop.eup %2054 }
 0x68f   : > { %1943 = vpush %v2055_v53 }
 0x6c0   : > { %s1944_s20 = spop %1943 }
 0x6c1   : > { %v1708_v54 = vstv %s1944_s20 }
 0x6c2   : > { %v1709_v0 = vmul.f32 %v1708_v54, %v1702_v50  ;;  %v1710_v55 = vmul.f32 %v1708_v54, %v1703_v51 }
 0x6c4   : > { %v1717_v57 = vmul.f32 %v1715_v56, %v1709_v0  ;;  %v1718_v58 = vmul.f32 %v1715_v56, %v1710_v55 }
 0x6c6   : > { %v1725_v60 = vadd.f32 %v1723_v59, %v1717_v57  ;;  %v1726_v61 = vadd.f32 %v1723_v59, %v1718_v58 }
 0x6c8   : > { %1727 = vst [vmem:[%s298_s18] sm:$0xff] %v1725_v60  ;;  %1728 = vst [vmem:[%s298_s18 + $0x8] sm:$0xff] %v1726_v61 }
 0x6c9   : > { %2069 = shalt.err (!%p2066_p3)
}
 0x6ca   : > { %s2070_s13 = scalar_lea.hbm %s2523_s12, 256  ;;  %s2074_s21 = scalar_lea.hbm %s2573_s8, 512 }
 0x6cb   : > { %p2071_p4 = scmp.ne.s32.totalorder %s2523_s12, %s2070_s13  ;;  %p2075_p9 = scmp.lt.u32.totalorder %s2523_s12, %s2573_s8 }
 0x6cc   : > { %p2076_p10 = scmp.lt.u32.totalorder %s2074_s21, %s2070_s13  ;;  %p2078_p12 = scmp.lt.u32.totalorder %s2070_s13, %s2523_s12 }
 0x6cd   : > { %p2072_p7 = pnand %p2071_p4, %p2215_p5 }
 0x6ce   : > { %p2077_p11 = por %p2076_p10, %p2075_p9 }
 0x6cf   : > { %p2073_p8 = pneg %p2072_p7 }
 0x6d0   : > { %p2079_p13 = por %p2078_p12, %p2077_p11 }
 0x6d2   : > { %p2080_p0 = pnand %p2079_p13, %p2073_p8 }
 0x6d4   : > { %2083 = shalt.err (!%p2080_p0)
}
 0x6d5   : > { %1945 = dma.vmem_to_hbm [thread:$0]  (%p2215_p5), %s2525_s19, 256, %s2523_s12, %s1730_s9  }
 0x6d6 PF: > { %p1951_p1 = scmp.ge.s32.totalorder %s2118_s30, 2  ;;  %s1756_s10 = sand.u32 1, %s2106_s27  }
 0x6d7   : > { %s1757_s23 = scalar_lea.sflag [#allocation5], %s1756_s10 }
 0x6d8   : > { %p1948_p2 = pnand %p1951_p1, %p2219_p6 }
 0x6da   : > { %2101 = dma.done.wait (!%p1948_p2), %s1757_s23, 256  }
 0x6db   : > { %2103 = vsyncadd (!%p1948_p2), %s1757_s23, 4294967040  ;;  %p18_p3 = scmp.ge.s32.totalorder %s2202_s11, 4   ;;  %s2588_s27 = smov %s2110_s28 }
 0x6dc   : > { %s2589_s28 = smov %s2114_s29  ;;  %s2590_s29 = smov %s2213_s14 }
 0x6dd   : > { %s2591_s30 = smov %s2202_s11  ;;  %20 = sbr.rel (!%p18_p3) target bundleno = 3 (0x3), region = 103 }
 0x6e4   :  { %1762 = vsyncpa [#allocation5], 1 }
 0x6e5   :  { %1764 = vsyncpa [#allocation5 + $0x1], 1 }

</bundles_post_ra>
